<compile_context>
chip_gen: v7x
topology: tpu7x:2x2x1
jax: 0.10.0
libtpu: 0.0.40
codegen_flags: <defaults>
</compile_context>

<pallas_src>
import functools

import jax
import jax.numpy as jnp
from jax import lax
from jax.experimental import pallas as pl
from jax.experimental.pallas import tpu as pltpu


def _cross_attn_kernel(q_in_ref, k_in_ref, v_in_ref,
                       wq_t_ref, wk_t_ref, wv_t_ref, wp_t_ref, bp_ref,
                       out_ref,
                       qp_ref, kp_ref, vp_ref, attn_ref,
                       *, num_heads, head_dim):
    """Grid = (batch, query-tile). One (tq, C) query tile per step."""
    j = pl.program_id(1)

    # Project K / V once per batch element. The query-tile axis is innermost
    # and "arbitrary", so this VMEM scratch persists across all query tiles
    # of the current batch element.
    @pl.when(j == 0)
    def _():
        kp = jnp.dot(k_in_ref[0], wk_t_ref[...],
                     preferred_element_type=jnp.float32)          # (Nk, C)
        vp = jnp.dot(v_in_ref[0], wv_t_ref[...],
                     preferred_element_type=jnp.float32)          # (Nk, C)
        kp_ref[...] = kp.astype(kp_ref.dtype)
        vp_ref[...] = vp.astype(vp_ref.dtype)

    # Query projection for this tile, staged into VMEM scratch so the head
    # loop reads per-head slices from a Ref (bounded liveness) instead of
    # slicing a large live value. The attention scale is already folded into
    # Wq on host, so no per-step multiply on the scores tensor is needed.
    qp = jnp.dot(q_in_ref[0], wq_t_ref[...],
                 preferred_element_type=jnp.float32)              # (tq, C)
    qp_ref[...] = qp.astype(qp_ref.dtype)

    # Per-head attention. Heads are static lane slices of the channel axis;
    # each head's output is written directly into the (tq, C) scratch slab,
    # so no lane-axis concatenate and minimal liveness per head.
    # TODO(synk): for production shapes with head_dim=64, heads could be
    # processed in pairs (128-lane operand slabs) to fully pack vregs.
    for h in range(num_heads):
        lo = h * head_dim
        hi = lo + head_dim
        qh = qp_ref[:, lo:hi]                                     # (tq, D)
        kh = kp_ref[:, lo:hi]                                     # (Nk, D)
        vh = vp_ref[:, lo:hi]                                     # (Nk, D)

        # q_h @ k_h^T without materialising a transpose: contract dim 1 vs 1.
        scores = lax.dot_general(
            qh, kh, (((1,), (1,)), ((), ())),
            preferred_element_type=jnp.float32)                   # (tq, Nk)

        # Numerically-stable softmax (fp32 VPU/EUP math).
        scores = scores - jnp.max(scores, axis=-1, keepdims=True)
        p = jnp.exp(scores)
        denom = jnp.sum(p, axis=-1, keepdims=True)                # (tq, 1)
        inv = pl.reciprocal(denom, approx=True)                   # EUP slot
        inv = inv * (2.0 - denom * inv)                           # Newton step

        oh = jnp.dot(p.astype(vh.dtype), vh,
                     preferred_element_type=jnp.float32)          # (tq, D)
        attn_ref[:, lo:hi] = oh * inv                             # normalize post-matmul

    # Output projection (with bias) on the full (tq, C) slab — one dense
    # (tq, C) @ (C, C) MXU matmul instead of H rank-D updates.
    out = jnp.dot(attn_ref[...], wp_t_ref[...],
                  preferred_element_type=jnp.float32) + bp_ref[...]
    out_ref[0] = out.astype(out_ref.dtype)


def _pick_q_tile(n, target):
    """Largest tile <= target that divides n (multiple of 8 unless full)."""
    if n <= target:
        return n
    for t in range(target, 7, -1):
        if n % t == 0 and t % 8 == 0:
            return t
    return n


def cross_attention(query, key, value, wq, wk, wv, wp, bp, *, num_heads,
                    use_bf16_mxu=False, q_tile_target=256,
                    vmem_limit_bytes=None):
    """Forward pass of CrossAttention (rope=None, qkv_bias=False, eval mode)."""
    B, Nq, C = query.shape
    Nk = key.shape[1]
    assert C % num_heads == 0, (C, num_heads)
    head_dim = C // num_heads
    scale = head_dim ** (-0.5)

    # Host-side prep: pre-transpose weights (kernel does x @ W_t in stored
    # layout) and fold the attention scale into the query projection.
    wq_t = (wq * scale).T           # (C, C) : in x out, scale folded in
    wk_t = wk.T
    wv_t = wv.T
    wp_t = wp.T
    bp2d = bp.reshape(1, C)

    tq = _pick_q_tile(Nq, q_tile_target)
    nqt = Nq // tq

    # bf16 operands for the attention matmuls (accumulation stays fp32).
    kv_dtype = jnp.bfloat16 if use_bf16_mxu else jnp.float32

    kernel = functools.partial(_cross_attn_kernel,
                               num_heads=num_heads, head_dim=head_dim)

    compiler_kwargs = dict(dimension_semantics=("parallel", "arbitrary"))
    if vmem_limit_bytes is not None:
        # e.g. raise beyond the 32 MiB default on v6e for large tiles.
        compiler_kwargs["vmem_limit_bytes"] = vmem_limit_bytes

    # Advisory cost hint for XLA scheduling around the custom call.
    flops = (2 * B * Nk * C * C * 2          # K, V projections
             + 2 * B * Nq * C * C * 2        # Q projection + output projection
             + 2 * B * Nq * Nk * C * 2)      # Q@K^T + P@V (summed over heads)
    transcendentals = B * num_heads * Nq * (Nk + 1)   # exp + reciprocal
    bytes_accessed = 4 * (2 * B * Nq * C + 2 * B * Nk * C + 4 * C * C + C)
    cost = pl.CostEstimate(flops=flops, transcendentals=transcendentals,
                           bytes_accessed=bytes_accessed)

    return pl.pallas_call(
        kernel,
        out_shape=jax.ShapeDtypeStruct((B, Nq, C), query.dtype),
        grid_spec=pltpu.PrefetchScalarGridSpec(
            num_scalar_prefetch=0,
            grid=(B, nqt),
            in_specs=[
                pl.BlockSpec((1, tq, C), lambda b, j: (b, j, 0)),   # query tile
                pl.BlockSpec((1, Nk, C), lambda b, j: (b, 0, 0)),   # key (per batch)
                pl.BlockSpec((1, Nk, C), lambda b, j: (b, 0, 0)),   # value (per batch)
                pl.BlockSpec((C, C), lambda b, j: (0, 0)),          # Wq^T (scaled)
                pl.BlockSpec((C, C), lambda b, j: (0, 0)),          # Wk^T
                pl.BlockSpec((C, C), lambda b, j: (0, 0)),          # Wv^T
                pl.BlockSpec((C, C), lambda b, j: (0, 0)),          # Wproj^T
                pl.BlockSpec((1, C), lambda b, j: (0, 0)),          # bproj
            ],
            out_specs=pl.BlockSpec((1, tq, C), lambda b, j: (b, j, 0)),
            scratch_shapes=[
                pltpu.VMEM((tq, C), kv_dtype),      # projected Q tile (staging)
                pltpu.VMEM((Nk, C), kv_dtype),      # projected K (persists per batch)
                pltpu.VMEM((Nk, C), kv_dtype),      # projected V (persists per batch)
                pltpu.VMEM((tq, C), jnp.float32),   # per-tile head-output slab
            ],
        ),
        compiler_params=pltpu.CompilerParams(**compiler_kwargs),
        cost_estimate=cost,
    )(query, key, value, wq_t, wk_t, wv_t, wp_t, bp2d)


def cross_attention_reference(query, key, value, wq, wk, wv, wp, bp, *, num_heads):
    """Pure-JAX reference mirroring the PyTorch module (rope=None, eval mode)."""
    B, Nq, C = query.shape
    Nk = key.shape[1]
    D = C // num_heads
    scale = D ** (-0.5)

    q = query @ wq.T
    k = key @ wk.T
    v = value @ wv.T

    q = q.reshape(B, Nq, num_heads, D).transpose(0, 2, 1, 3)   # (B,H,Nq,D)
    k = k.reshape(B, Nk, num_heads, D).transpose(0, 2, 1, 3)   # (B,H,Nk,D)
    v = v.reshape(B, Nk, num_heads, D).transpose(0, 2, 1, 3)   # (B,H,Nk,D)

    scores = jnp.einsum("bhqd,bhkd->bhqk", q, k) * scale
    p = jax.nn.softmax(scores, axis=-1)
    x = jnp.einsum("bhqk,bhkd->bhqd", p, v)
    x = x.transpose(0, 2, 1, 3).reshape(B, Nq, C)
    return x @ wp.T + bp


if __name__ == "__main__":
    B = 2          # batch
    Nq = 8         # query sequence length
    Nk = 16        # key/value sequence length (cross attention)
    C = 32         # hidden dim
    H = 8          # num_heads -> head_dim = 4

    root = jax.random.PRNGKey(0)
    kq, kk, kv, kwq, kwk, kwv, kwp, kbp = jax.random.split(root, 8)

    query = jax.random.normal(kq, (B, Nq, C), dtype=jnp.float32)
    key = jax.random.normal(kk, (B, Nk, C), dtype=jnp.float32)
    value = jax.random.normal(kv, (B, Nk, C), dtype=jnp.float32)

    # Deterministic synthetic parameters (PyTorch Linear: weight (out, in)).
    w_scale = 0.1
    wq = jax.random.normal(kwq, (C, C), dtype=jnp.float32) * w_scale
    wk = jax.random.normal(kwk, (C, C), dtype=jnp.float32) * w_scale
    wv = jax.random.normal(kwv, (C, C), dtype=jnp.float32) * w_scale
    wp = jax.random.normal(kwp, (C, C), dtype=jnp.float32) * w_scale
    bp = jax.random.normal(kbp, (C,), dtype=jnp.float32) * w_scale

    ref = cross_attention_reference(query, key, value, wq, wk, wv, wp, bp,
                                    num_heads=H)
    ref = jax.block_until_ready(ref)

    # fp32 MXU path (default): must match the reference tightly.
    out = cross_attention(query, key, value, wq, wk, wv, wp, bp, num_heads=H)
    out = jax.block_until_ready(out)
    assert out.shape == (B, Nq, C), out.shape
    assert jnp.allclose(out, ref, rtol=1e-4, atol=1e-4), (
        float(jnp.max(jnp.abs(out - ref))))

    # bf16 attention-operand path (production option): loose tolerance.
    out_bf16 = cross_attention(query, key, value, wq, wk, wv, wp, bp,
                               num_heads=H, use_bf16_mxu=True)
    out_bf16 = jax.block_until_ready(out_bf16)
    assert jnp.allclose(out_bf16, ref, rtol=5e-2, atol=5e-2), (
        float(jnp.max(jnp.abs(out_bf16 - ref))))

    print("KERNEL_OK")
</pallas_src>

<mosaic_0001>
module attributes {stable_mosaic.version = 11 : i64} {
  func.func @_cross_attn_kernel(%arg0: i32, %arg1: i32, %arg2: memref<1x8x32xf32, #tpu.memory_space<vmem>>, %arg3: memref<1x16x32xf32, #tpu.memory_space<vmem>>, %arg4: memref<1x16x32xf32, #tpu.memory_space<vmem>>, %arg5: memref<32x32xf32, #tpu.memory_space<vmem>>, %arg6: memref<32x32xf32, #tpu.memory_space<vmem>>, %arg7: memref<32x32xf32, #tpu.memory_space<vmem>>, %arg8: memref<32x32xf32, #tpu.memory_space<vmem>>, %arg9: memref<1x32xf32, #tpu.memory_space<vmem>>, %arg10: memref<1x8x32xf32, #tpu.memory_space<vmem>>, %arg11: memref<8x32xf32, #tpu.memory_space<vmem>>, %arg12: memref<16x32xf32, #tpu.memory_space<vmem>>, %arg13: memref<16x32xf32, #tpu.memory_space<vmem>>, %arg14: memref<8x32xf32, #tpu.memory_space<vmem>>) attributes {dimension_semantics = [#tpu.dimension_semantics<parallel>, #tpu.dimension_semantics<arbitrary>], iteration_bounds = array<i64: 2, 1>, scalar_prefetch = 0 : i64, scratch_operands = 4 : i64, tpu.core_type = #tpu.core_type<tc>, window_params = [{transform_indices = @transform_0, window_bounds = array<i64: 1, 8, 32>}, {transform_indices = @transform_1, window_bounds = array<i64: 1, 16, 32>}, {transform_indices = @transform_2, window_bounds = array<i64: 1, 16, 32>}, {pipeline_mode = #tpu.pipeline_mode<synchronous>, transform_indices = @transform_3, window_bounds = array<i64: 32, 32>}, {pipeline_mode = #tpu.pipeline_mode<synchronous>, transform_indices = @transform_4, window_bounds = array<i64: 32, 32>}, {pipeline_mode = #tpu.pipeline_mode<synchronous>, transform_indices = @transform_5, window_bounds = array<i64: 32, 32>}, {pipeline_mode = #tpu.pipeline_mode<synchronous>, transform_indices = @transform_6, window_bounds = array<i64: 32, 32>}, {pipeline_mode = #tpu.pipeline_mode<synchronous>, transform_indices = @transform_7, window_bounds = array<i64: 1, 32>}, {transform_indices = @transform_8, window_bounds = array<i64: 1, 8, 32>}]} {
    %c0_i32 = arith.constant 0 : i32
    %0 = arith.cmpi eq, %arg1, %c0_i32 : i32
    %1 = arith.extui %0 : i1 to i32
    %c0_i32_0 = arith.constant 0 : i32
    %2 = arith.cmpi ne, %1, %c0_i32_0 : i32
    scf.if %2 {
      %c0_114 = arith.constant 0 : index
      %c0_115 = arith.constant 0 : index
      %c0_116 = arith.constant 0 : index
      %177 = vector.load %arg3[%c0_114, %c0_115, %c0_116] : memref<1x16x32xf32, #tpu.memory_space<vmem>>, vector<1x16x32xf32>
      %178 = vector.shape_cast %177 : vector<1x16x32xf32> to vector<16x32xf32>
      %c0_117 = arith.constant 0 : index
      %c0_118 = arith.constant 0 : index
      %179 = vector.load %arg6[%c0_117, %c0_118] : memref<32x32xf32, #tpu.memory_space<vmem>>, vector<32x32xf32>
      %cst_119 = arith.constant dense<0.000000e+00> : vector<16x32xf32>
      %180 = tpu.matmul %178, %179, %cst_119 {dimension_numbers = #tpu.dot_dimension_numbers<[1], [0], [0], [1], [0, 0, 1, 1], [], []>} : vector<16x32xf32>, vector<32x32xf32>, vector<16x32xf32> -> vector<16x32xf32>
      %c0_120 = arith.constant 0 : index
      %c0_121 = arith.constant 0 : index
      %c0_122 = arith.constant 0 : index
      %181 = vector.load %arg4[%c0_120, %c0_121, %c0_122] : memref<1x16x32xf32, #tpu.memory_space<vmem>>, vector<1x16x32xf32>
      %182 = vector.shape_cast %181 : vector<1x16x32xf32> to vector<16x32xf32>
      %c0_123 = arith.constant 0 : index
      %c0_124 = arith.constant 0 : index
      %183 = vector.load %arg7[%c0_123, %c0_124] : memref<32x32xf32, #tpu.memory_space<vmem>>, vector<32x32xf32>
      %cst_125 = arith.constant dense<0.000000e+00> : vector<16x32xf32>
      %184 = tpu.matmul %182, %183, %cst_125 {dimension_numbers = #tpu.dot_dimension_numbers<[1], [0], [0], [1], [0, 0, 1, 1], [], []>} : vector<16x32xf32>, vector<32x32xf32>, vector<16x32xf32> -> vector<16x32xf32>
      %c0_126 = arith.constant 0 : index
      %c0_127 = arith.constant 0 : index
      %185 = vector.load %arg12[%c0_126, %c0_127] : memref<16x32xf32, #tpu.memory_space<vmem>>, vector<16x32xf32>
      tpu.vector_store %arg12[%c0_126, %c0_127], %180 {strides = array<i32>} : memref<16x32xf32, #tpu.memory_space<vmem>>, vector<16x32xf32>,
      %c0_128 = arith.constant 0 : index
      %c0_129 = arith.constant 0 : index
      %186 = vector.load %arg13[%c0_128, %c0_129] : memref<16x32xf32, #tpu.memory_space<vmem>>, vector<16x32xf32>
      tpu.vector_store %arg13[%c0_128, %c0_129], %184 {strides = array<i32>} : memref<16x32xf32, #tpu.memory_space<vmem>>, vector<16x32xf32>,
    } else {
    }
    %c0 = arith.constant 0 : index
    %c0_1 = arith.constant 0 : index
    %c0_2 = arith.constant 0 : index
    %3 = vector.load %arg2[%c0, %c0_1, %c0_2] : memref<1x8x32xf32, #tpu.memory_space<vmem>>, vector<1x8x32xf32>
    %4 = vector.shape_cast %3 : vector<1x8x32xf32> to vector<8x32xf32>
    %c0_3 = arith.constant 0 : index
    %c0_4 = arith.constant 0 : index
    %5 = vector.load %arg5[%c0_3, %c0_4] : memref<32x32xf32, #tpu.memory_space<vmem>>, vector<32x32xf32>
    %cst = arith.constant dense<0.000000e+00> : vector<8x32xf32>
    %6 = tpu.matmul %4, %5, %cst {dimension_numbers = #tpu.dot_dimension_numbers<[1], [0], [0], [1], [0, 0, 1, 1], [], []>} : vector<8x32xf32>, vector<32x32xf32>, vector<8x32xf32> -> vector<8x32xf32>
    %c0_5 = arith.constant 0 : index
    %c0_6 = arith.constant 0 : index
    %7 = vector.load %arg11[%c0_5, %c0_6] : memref<8x32xf32, #tpu.memory_space<vmem>>, vector<8x32xf32>
    tpu.vector_store %arg11[%c0_5, %c0_6], %6 {strides = array<i32>} : memref<8x32xf32, #tpu.memory_space<vmem>>, vector<8x32xf32>,
    %c0_7 = arith.constant 0 : index
    %c0_8 = arith.constant 0 : index
    %8 = vector.load %arg11[%c0_7, %c0_8] : memref<8x32xf32, #tpu.memory_space<vmem>>, vector<8x4xf32>
    %c0_9 = arith.constant 0 : index
    %c0_10 = arith.constant 0 : index
    %9 = vector.load %arg12[%c0_9, %c0_10] : memref<16x32xf32, #tpu.memory_space<vmem>>, vector<16x4xf32>
    %c0_11 = arith.constant 0 : index
    %c0_12 = arith.constant 0 : index
    %10 = vector.load %arg13[%c0_11, %c0_12] : memref<16x32xf32, #tpu.memory_space<vmem>>, vector<16x4xf32>
    %cst_13 = arith.constant dense<0.000000e+00> : vector<8x16xf32>
    %11 = tpu.matmul %8, %9, %cst_13 {dimension_numbers = #tpu.dot_dimension_numbers<[1], [1], [0], [0], [0, 0, 1, 0], [], []>} : vector<8x4xf32>, vector<16x4xf32>, vector<8x16xf32> -> vector<8x16xf32>
    %cst_14 = arith.constant dense<0xFF800000> : vector<8xf32>
    %12 = vector.multi_reduction <maximumf>, %11, %cst_14 [1] : vector<8x16xf32> to vector<8xf32>
    %13 = vector.shape_cast %12 : vector<8xf32> to vector<8x1xf32>
    %14 = vector.broadcast %13 : vector<8x1xf32> to vector<8x16xf32>
    %15 = arith.subf %11, %14 : vector<8x16xf32>
    %16 = math.exp %15 : vector<8x16xf32>
    %cst_15 = arith.constant dense<0.000000e+00> : vector<8xf32>
    %17 = vector.multi_reduction <add>, %16, %cst_15 [1] : vector<8x16xf32> to vector<8xf32>
    %18 = vector.shape_cast %17 : vector<8xf32> to vector<8x1xf32>
    %19 = tpu.reciprocal %18 {approx = true} : vector<8x1xf32> -> vector<8x1xf32>
    %20 = arith.mulf %18, %19 : vector<8x1xf32>
    %cst_16 = arith.constant 2.000000e+00 : f32
    %21 = vector.broadcast %cst_16 : f32 to vector<8x1xf32>
    %22 = arith.subf %21, %20 : vector<8x1xf32>
    %23 = arith.mulf %19, %22 : vector<8x1xf32>
    %cst_17 = arith.constant dense<0.000000e+00> : vector<8x4xf32>
    %24 = tpu.matmul %16, %10, %cst_17 {dimension_numbers = #tpu.dot_dimension_numbers<[1], [0], [0], [1], [0, 0, 1, 1], [], []>} : vector<8x16xf32>, vector<16x4xf32>, vector<8x4xf32> -> vector<8x4xf32>
    %25 = vector.broadcast %23 : vector<8x1xf32> to vector<8x4xf32>
    %26 = arith.mulf %24, %25 : vector<8x4xf32>
    %c0_18 = arith.constant 0 : index
    %c0_19 = arith.constant 0 : index
    %27 = vector.load %arg14[%c0_18, %c0_19] : memref<8x32xf32, #tpu.memory_space<vmem>>, vector<8x4xf32>
    tpu.vector_store %arg14[%c0_18, %c0_19], %26 {strides = array<i32>} : memref<8x32xf32, #tpu.memory_space<vmem>>, vector<8x4xf32>,
    %c0_20 = arith.constant 0 : index
    %c4 = arith.constant 4 : index
    %28 = vector.load %arg11[%c0_20, %c4] : memref<8x32xf32, #tpu.memory_space<vmem>>, vector<8x4xf32>
    %c0_21 = arith.constant 0 : index
    %c4_22 = arith.constant 4 : index
    %29 = vector.load %arg12[%c0_21, %c4_22] : memref<16x32xf32, #tpu.memory_space<vmem>>, vector<16x4xf32>
    %c0_23 = arith.constant 0 : index
    %c4_24 = arith.constant 4 : index
    %30 = vector.load %arg13[%c0_23, %c4_24] : memref<16x32xf32, #tpu.memory_space<vmem>>, vector<16x4xf32>
    %cst_25 = arith.constant dense<0.000000e+00> : vector<8x16xf32>
    %31 = tpu.matmul %28, %29, %cst_25 {dimension_numbers = #tpu.dot_dimension_numbers<[1], [1], [0], [0], [0, 0, 1, 0], [], []>} : vector<8x4xf32>, vector<16x4xf32>, vector<8x16xf32> -> vector<8x16xf32>
    %cst_26 = arith.constant dense<0xFF800000> : vector<8xf32>
    %32 = vector.multi_reduction <maximumf>, %31, %cst_26 [1] : vector<8x16xf32> to vector<8xf32>
    %33 = vector.shape_cast %32 : vector<8xf32> to vector<8x1xf32>
    %34 = vector.broadcast %33 : vector<8x1xf32> to vector<8x16xf32>
    %35 = arith.subf %31, %34 : vector<8x16xf32>
    %36 = math.exp %35 : vector<8x16xf32>
    %cst_27 = arith.constant dense<0.000000e+00> : vector<8xf32>
    %37 = vector.multi_reduction <add>, %36, %cst_27 [1] : vector<8x16xf32> to vector<8xf32>
    %38 = vector.shape_cast %37 : vector<8xf32> to vector<8x1xf32>
    %39 = tpu.reciprocal %38 {approx = true} : vector<8x1xf32> -> vector<8x1xf32>
    %40 = arith.mulf %38, %39 : vector<8x1xf32>
    %cst_28 = arith.constant 2.000000e+00 : f32
    %41 = vector.broadcast %cst_28 : f32 to vector<8x1xf32>
    %42 = arith.subf %41, %40 : vector<8x1xf32>
    %43 = arith.mulf %39, %42 : vector<8x1xf32>
    %cst_29 = arith.constant dense<0.000000e+00> : vector<8x4xf32>
    %44 = tpu.matmul %36, %30, %cst_29 {dimension_numbers = #tpu.dot_dimension_numbers<[1], [0], [0], [1], [0, 0, 1, 1], [], []>} : vector<8x16xf32>, vector<16x4xf32>, vector<8x4xf32> -> vector<8x4xf32>
    %45 = vector.broadcast %43 : vector<8x1xf32> to vector<8x4xf32>
    %46 = arith.mulf %44, %45 : vector<8x4xf32>
    %c0_30 = arith.constant 0 : index
    %c4_31 = arith.constant 4 : index
    %47 = vector.load %arg14[%c0_30, %c4_31] : memref<8x32xf32, #tpu.memory_space<vmem>>, vector<8x4xf32>
    tpu.vector_store %arg14[%c0_30, %c4_31], %46 {strides = array<i32>} : memref<8x32xf32, #tpu.memory_space<vmem>>, vector<8x4xf32>,
    %c0_32 = arith.constant 0 : index
    %c8 = arith.constant 8 : index
    %48 = vector.load %arg11[%c0_32, %c8] : memref<8x32xf32, #tpu.memory_space<vmem>>, vector<8x4xf32>
    %c0_33 = arith.constant 0 : index
    %c8_34 = arith.constant 8 : index
    %49 = vector.load %arg12[%c0_33, %c8_34] : memref<16x32xf32, #tpu.memory_space<vmem>>, vector<16x4xf32>
    %c0_35 = arith.constant 0 : index
    %c8_36 = arith.constant 8 : index
    %50 = vector.load %arg13[%c0_35, %c8_36] : memref<16x32xf32, #tpu.memory_space<vmem>>, vector<16x4xf32>
    %cst_37 = arith.constant dense<0.000000e+00> : vector<8x16xf32>
    %51 = tpu.matmul %48, %49, %cst_37 {dimension_numbers = #tpu.dot_dimension_numbers<[1], [1], [0], [0], [0, 0, 1, 0], [], []>} : vector<8x4xf32>, vector<16x4xf32>, vector<8x16xf32> -> vector<8x16xf32>
    %cst_38 = arith.constant dense<0xFF800000> : vector<8xf32>
    %52 = vector.multi_reduction <maximumf>, %51, %cst_38 [1] : vector<8x16xf32> to vector<8xf32>
    %53 = vector.shape_cast %52 : vector<8xf32> to vector<8x1xf32>
    %54 = vector.broadcast %53 : vector<8x1xf32> to vector<8x16xf32>
    %55 = arith.subf %51, %54 : vector<8x16xf32>
    %56 = math.exp %55 : vector<8x16xf32>
    %cst_39 = arith.constant dense<0.000000e+00> : vector<8xf32>
    %57 = vector.multi_reduction <add>, %56, %cst_39 [1] : vector<8x16xf32> to vector<8xf32>
    %58 = vector.shape_cast %57 : vector<8xf32> to vector<8x1xf32>
    %59 = tpu.reciprocal %58 {approx = true} : vector<8x1xf32> -> vector<8x1xf32>
    %60 = arith.mulf %58, %59 : vector<8x1xf32>
    %cst_40 = arith.constant 2.000000e+00 : f32
    %61 = vector.broadcast %cst_40 : f32 to vector<8x1xf32>
    %62 = arith.subf %61, %60 : vector<8x1xf32>
    %63 = arith.mulf %59, %62 : vector<8x1xf32>
    %cst_41 = arith.constant dense<0.000000e+00> : vector<8x4xf32>
    %64 = tpu.matmul %56, %50, %cst_41 {dimension_numbers = #tpu.dot_dimension_numbers<[1], [0], [0], [1], [0, 0, 1, 1], [], []>} : vector<8x16xf32>, vector<16x4xf32>, vector<8x4xf32> -> vector<8x4xf32>
    %65 = vector.broadcast %63 : vector<8x1xf32> to vector<8x4xf32>
    %66 = arith.mulf %64, %65 : vector<8x4xf32>
    %c0_42 = arith.constant 0 : index
    %c8_43 = arith.constant 8 : index
    %67 = vector.load %arg14[%c0_42, %c8_43] : memref<8x32xf32, #tpu.memory_space<vmem>>, vector<8x4xf32>
    tpu.vector_store %arg14[%c0_42, %c8_43], %66 {strides = array<i32>} : memref<8x32xf32, #tpu.memory_space<vmem>>, vector<8x4xf32>,
    %c0_44 = arith.constant 0 : index
    %c12 = arith.constant 12 : index
    %68 = vector.load %arg11[%c0_44, %c12] : memref<8x32xf32, #tpu.memory_space<vmem>>, vector<8x4xf32>
    %c0_45 = arith.constant 0 : index
    %c12_46 = arith.constant 12 : index
    %69 = vector.load %arg12[%c0_45, %c12_46] : memref<16x32xf32, #tpu.memory_space<vmem>>, vector<16x4xf32>
    %c0_47 = arith.constant 0 : index
    %c12_48 = arith.constant 12 : index
    %70 = vector.load %arg13[%c0_47, %c12_48] : memref<16x32xf32, #tpu.memory_space<vmem>>, vector<16x4xf32>
    %cst_49 = arith.constant dense<0.000000e+00> : vector<8x16xf32>
    %71 = tpu.matmul %68, %69, %cst_49 {dimension_numbers = #tpu.dot_dimension_numbers<[1], [1], [0], [0], [0, 0, 1, 0], [], []>} : vector<8x4xf32>, vector<16x4xf32>, vector<8x16xf32> -> vector<8x16xf32>
    %cst_50 = arith.constant dense<0xFF800000> : vector<8xf32>
    %72 = vector.multi_reduction <maximumf>, %71, %cst_50 [1] : vector<8x16xf32> to vector<8xf32>
    %73 = vector.shape_cast %72 : vector<8xf32> to vector<8x1xf32>
    %74 = vector.broadcast %73 : vector<8x1xf32> to vector<8x16xf32>
    %75 = arith.subf %71, %74 : vector<8x16xf32>
    %76 = math.exp %75 : vector<8x16xf32>
    %cst_51 = arith.constant dense<0.000000e+00> : vector<8xf32>
    %77 = vector.multi_reduction <add>, %76, %cst_51 [1] : vector<8x16xf32> to vector<8xf32>
    %78 = vector.shape_cast %77 : vector<8xf32> to vector<8x1xf32>
    %79 = tpu.reciprocal %78 {approx = true} : vector<8x1xf32> -> vector<8x1xf32>
    %80 = arith.mulf %78, %79 : vector<8x1xf32>
    %cst_52 = arith.constant 2.000000e+00 : f32
    %81 = vector.broadcast %cst_52 : f32 to vector<8x1xf32>
    %82 = arith.subf %81, %80 : vector<8x1xf32>
    %83 = arith.mulf %79, %82 : vector<8x1xf32>
    %cst_53 = arith.constant dense<0.000000e+00> : vector<8x4xf32>
    %84 = tpu.matmul %76, %70, %cst_53 {dimension_numbers = #tpu.dot_dimension_numbers<[1], [0], [0], [1], [0, 0, 1, 1], [], []>} : vector<8x16xf32>, vector<16x4xf32>, vector<8x4xf32> -> vector<8x4xf32>
    %85 = vector.broadcast %83 : vector<8x1xf32> to vector<8x4xf32>
    %86 = arith.mulf %84, %85 : vector<8x4xf32>
    %c0_54 = arith.constant 0 : index
    %c12_55 = arith.constant 12 : index
    %87 = vector.load %arg14[%c0_54, %c12_55] : memref<8x32xf32, #tpu.memory_space<vmem>>, vector<8x4xf32>
    tpu.vector_store %arg14[%c0_54, %c12_55], %86 {strides = array<i32>} : memref<8x32xf32, #tpu.memory_space<vmem>>, vector<8x4xf32>,
    %c0_56 = arith.constant 0 : index
    %c16 = arith.constant 16 : index
    %88 = vector.load %arg11[%c0_56, %c16] : memref<8x32xf32, #tpu.memory_space<vmem>>, vector<8x4xf32>
    %c0_57 = arith.constant 0 : index
    %c16_58 = arith.constant 16 : index
    %89 = vector.load %arg12[%c0_57, %c16_58] : memref<16x32xf32, #tpu.memory_space<vmem>>, vector<16x4xf32>
    %c0_59 = arith.constant 0 : index
    %c16_60 = arith.constant 16 : index
    %90 = vector.load %arg13[%c0_59, %c16_60] : memref<16x32xf32, #tpu.memory_space<vmem>>, vector<16x4xf32>
    %cst_61 = arith.constant dense<0.000000e+00> : vector<8x16xf32>
    %91 = tpu.matmul %88, %89, %cst_61 {dimension_numbers = #tpu.dot_dimension_numbers<[1], [1], [0], [0], [0, 0, 1, 0], [], []>} : vector<8x4xf32>, vector<16x4xf32>, vector<8x16xf32> -> vector<8x16xf32>
    %cst_62 = arith.constant dense<0xFF800000> : vector<8xf32>
    %92 = vector.multi_reduction <maximumf>, %91, %cst_62 [1] : vector<8x16xf32> to vector<8xf32>
    %93 = vector.shape_cast %92 : vector<8xf32> to vector<8x1xf32>
    %94 = vector.broadcast %93 : vector<8x1xf32> to vector<8x16xf32>
    %95 = arith.subf %91, %94 : vector<8x16xf32>
    %96 = math.exp %95 : vector<8x16xf32>
    %cst_63 = arith.constant dense<0.000000e+00> : vector<8xf32>
    %97 = vector.multi_reduction <add>, %96, %cst_63 [1] : vector<8x16xf32> to vector<8xf32>
    %98 = vector.shape_cast %97 : vector<8xf32> to vector<8x1xf32>
    %99 = tpu.reciprocal %98 {approx = true} : vector<8x1xf32> -> vector<8x1xf32>
    %100 = arith.mulf %98, %99 : vector<8x1xf32>
    %cst_64 = arith.constant 2.000000e+00 : f32
    %101 = vector.broadcast %cst_64 : f32 to vector<8x1xf32>
    %102 = arith.subf %101, %100 : vector<8x1xf32>
    %103 = arith.mulf %99, %102 : vector<8x1xf32>
    %cst_65 = arith.constant dense<0.000000e+00> : vector<8x4xf32>
    %104 = tpu.matmul %96, %90, %cst_65 {dimension_numbers = #tpu.dot_dimension_numbers<[1], [0], [0], [1], [0, 0, 1, 1], [], []>} : vector<8x16xf32>, vector<16x4xf32>, vector<8x4xf32> -> vector<8x4xf32>
    %105 = vector.broadcast %103 : vector<8x1xf32> to vector<8x4xf32>
    %106 = arith.mulf %104, %105 : vector<8x4xf32>
    %c0_66 = arith.constant 0 : index
    %c16_67 = arith.constant 16 : index
    %107 = vector.load %arg14[%c0_66, %c16_67] : memref<8x32xf32, #tpu.memory_space<vmem>>, vector<8x4xf32>
    tpu.vector_store %arg14[%c0_66, %c16_67], %106 {strides = array<i32>} : memref<8x32xf32, #tpu.memory_space<vmem>>, vector<8x4xf32>,
    %c0_68 = arith.constant 0 : index
    %c20 = arith.constant 20 : index
    %108 = vector.load %arg11[%c0_68, %c20] : memref<8x32xf32, #tpu.memory_space<vmem>>, vector<8x4xf32>
    %c0_69 = arith.constant 0 : index
    %c20_70 = arith.constant 20 : index
    %109 = vector.load %arg12[%c0_69, %c20_70] : memref<16x32xf32, #tpu.memory_space<vmem>>, vector<16x4xf32>
    %c0_71 = arith.constant 0 : index
    %c20_72 = arith.constant 20 : index
    %110 = vector.load %arg13[%c0_71, %c20_72] : memref<16x32xf32, #tpu.memory_space<vmem>>, vector<16x4xf32>
    %cst_73 = arith.constant dense<0.000000e+00> : vector<8x16xf32>
    %111 = tpu.matmul %108, %109, %cst_73 {dimension_numbers = #tpu.dot_dimension_numbers<[1], [1], [0], [0], [0, 0, 1, 0], [], []>} : vector<8x4xf32>, vector<16x4xf32>, vector<8x16xf32> -> vector<8x16xf32>
    %cst_74 = arith.constant dense<0xFF800000> : vector<8xf32>
    %112 = vector.multi_reduction <maximumf>, %111, %cst_74 [1] : vector<8x16xf32> to vector<8xf32>
    %113 = vector.shape_cast %112 : vector<8xf32> to vector<8x1xf32>
    %114 = vector.broadcast %113 : vector<8x1xf32> to vector<8x16xf32>
    %115 = arith.subf %111, %114 : vector<8x16xf32>
    %116 = math.exp %115 : vector<8x16xf32>
    %cst_75 = arith.constant dense<0.000000e+00> : vector<8xf32>
    %117 = vector.multi_reduction <add>, %116, %cst_75 [1] : vector<8x16xf32> to vector<8xf32>
    %118 = vector.shape_cast %117 : vector<8xf32> to vector<8x1xf32>
    %119 = tpu.reciprocal %118 {approx = true} : vector<8x1xf32> -> vector<8x1xf32>
    %120 = arith.mulf %118, %119 : vector<8x1xf32>
    %cst_76 = arith.constant 2.000000e+00 : f32
    %121 = vector.broadcast %cst_76 : f32 to vector<8x1xf32>
    %122 = arith.subf %121, %120 : vector<8x1xf32>
    %123 = arith.mulf %119, %122 : vector<8x1xf32>
    %cst_77 = arith.constant dense<0.000000e+00> : vector<8x4xf32>
    %124 = tpu.matmul %116, %110, %cst_77 {dimension_numbers = #tpu.dot_dimension_numbers<[1], [0], [0], [1], [0, 0, 1, 1], [], []>} : vector<8x16xf32>, vector<16x4xf32>, vector<8x4xf32> -> vector<8x4xf32>
    %125 = vector.broadcast %123 : vector<8x1xf32> to vector<8x4xf32>
    %126 = arith.mulf %124, %125 : vector<8x4xf32>
    %c0_78 = arith.constant 0 : index
    %c20_79 = arith.constant 20 : index
    %127 = vector.load %arg14[%c0_78, %c20_79] : memref<8x32xf32, #tpu.memory_space<vmem>>, vector<8x4xf32>
    tpu.vector_store %arg14[%c0_78, %c20_79], %126 {strides = array<i32>} : memref<8x32xf32, #tpu.memory_space<vmem>>, vector<8x4xf32>,
    %c0_80 = arith.constant 0 : index
    %c24 = arith.constant 24 : index
    %128 = vector.load %arg11[%c0_80, %c24] : memref<8x32xf32, #tpu.memory_space<vmem>>, vector<8x4xf32>
    %c0_81 = arith.constant 0 : index
    %c24_82 = arith.constant 24 : index
    %129 = vector.load %arg12[%c0_81, %c24_82] : memref<16x32xf32, #tpu.memory_space<vmem>>, vector<16x4xf32>
    %c0_83 = arith.constant 0 : index
    %c24_84 = arith.constant 24 : index
    %130 = vector.load %arg13[%c0_83, %c24_84] : memref<16x32xf32, #tpu.memory_space<vmem>>, vector<16x4xf32>
    %cst_85 = arith.constant dense<0.000000e+00> : vector<8x16xf32>
    %131 = tpu.matmul %128, %129, %cst_85 {dimension_numbers = #tpu.dot_dimension_numbers<[1], [1], [0], [0], [0, 0, 1, 0], [], []>} : vector<8x4xf32>, vector<16x4xf32>, vector<8x16xf32> -> vector<8x16xf32>
    %cst_86 = arith.constant dense<0xFF800000> : vector<8xf32>
    %132 = vector.multi_reduction <maximumf>, %131, %cst_86 [1] : vector<8x16xf32> to vector<8xf32>
    %133 = vector.shape_cast %132 : vector<8xf32> to vector<8x1xf32>
    %134 = vector.broadcast %133 : vector<8x1xf32> to vector<8x16xf32>
    %135 = arith.subf %131, %134 : vector<8x16xf32>
    %136 = math.exp %135 : vector<8x16xf32>
    %cst_87 = arith.constant dense<0.000000e+00> : vector<8xf32>
    %137 = vector.multi_reduction <add>, %136, %cst_87 [1] : vector<8x16xf32> to vector<8xf32>
    %138 = vector.shape_cast %137 : vector<8xf32> to vector<8x1xf32>
    %139 = tpu.reciprocal %138 {approx = true} : vector<8x1xf32> -> vector<8x1xf32>
    %140 = arith.mulf %138, %139 : vector<8x1xf32>
    %cst_88 = arith.constant 2.000000e+00 : f32
    %141 = vector.broadcast %cst_88 : f32 to vector<8x1xf32>
    %142 = arith.subf %141, %140 : vector<8x1xf32>
    %143 = arith.mulf %139, %142 : vector<8x1xf32>
    %cst_89 = arith.constant dense<0.000000e+00> : vector<8x4xf32>
    %144 = tpu.matmul %136, %130, %cst_89 {dimension_numbers = #tpu.dot_dimension_numbers<[1], [0], [0], [1], [0, 0, 1, 1], [], []>} : vector<8x16xf32>, vector<16x4xf32>, vector<8x4xf32> -> vector<8x4xf32>
    %145 = vector.broadcast %143 : vector<8x1xf32> to vector<8x4xf32>
    %146 = arith.mulf %144, %145 : vector<8x4xf32>
    %c0_90 = arith.constant 0 : index
    %c24_91 = arith.constant 24 : index
    %147 = vector.load %arg14[%c0_90, %c24_91] : memref<8x32xf32, #tpu.memory_space<vmem>>, vector<8x4xf32>
    tpu.vector_store %arg14[%c0_90, %c24_91], %146 {strides = array<i32>} : memref<8x32xf32, #tpu.memory_space<vmem>>, vector<8x4xf32>,
    %c0_92 = arith.constant 0 : index
    %c28 = arith.constant 28 : index
    %148 = vector.load %arg11[%c0_92, %c28] : memref<8x32xf32, #tpu.memory_space<vmem>>, vector<8x4xf32>
    %c0_93 = arith.constant 0 : index
    %c28_94 = arith.constant 28 : index
    %149 = vector.load %arg12[%c0_93, %c28_94] : memref<16x32xf32, #tpu.memory_space<vmem>>, vector<16x4xf32>
    %c0_95 = arith.constant 0 : index
    %c28_96 = arith.constant 28 : index
    %150 = vector.load %arg13[%c0_95, %c28_96] : memref<16x32xf32, #tpu.memory_space<vmem>>, vector<16x4xf32>
    %cst_97 = arith.constant dense<0.000000e+00> : vector<8x16xf32>
    %151 = tpu.matmul %148, %149, %cst_97 {dimension_numbers = #tpu.dot_dimension_numbers<[1], [1], [0], [0], [0, 0, 1, 0], [], []>} : vector<8x4xf32>, vector<16x4xf32>, vector<8x16xf32> -> vector<8x16xf32>
    %cst_98 = arith.constant dense<0xFF800000> : vector<8xf32>
    %152 = vector.multi_reduction <maximumf>, %151, %cst_98 [1] : vector<8x16xf32> to vector<8xf32>
    %153 = vector.shape_cast %152 : vector<8xf32> to vector<8x1xf32>
    %154 = vector.broadcast %153 : vector<8x1xf32> to vector<8x16xf32>
    %155 = arith.subf %151, %154 : vector<8x16xf32>
    %156 = math.exp %155 : vector<8x16xf32>
    %cst_99 = arith.constant dense<0.000000e+00> : vector<8xf32>
    %157 = vector.multi_reduction <add>, %156, %cst_99 [1] : vector<8x16xf32> to vector<8xf32>
    %158 = vector.shape_cast %157 : vector<8xf32> to vector<8x1xf32>
    %159 = tpu.reciprocal %158 {approx = true} : vector<8x1xf32> -> vector<8x1xf32>
    %160 = arith.mulf %158, %159 : vector<8x1xf32>
    %cst_100 = arith.constant 2.000000e+00 : f32
    %161 = vector.broadcast %cst_100 : f32 to vector<8x1xf32>
    %162 = arith.subf %161, %160 : vector<8x1xf32>
    %163 = arith.mulf %159, %162 : vector<8x1xf32>
    %cst_101 = arith.constant dense<0.000000e+00> : vector<8x4xf32>
    %164 = tpu.matmul %156, %150, %cst_101 {dimension_numbers = #tpu.dot_dimension_numbers<[1], [0], [0], [1], [0, 0, 1, 1], [], []>} : vector<8x16xf32>, vector<16x4xf32>, vector<8x4xf32> -> vector<8x4xf32>
    %165 = vector.broadcast %163 : vector<8x1xf32> to vector<8x4xf32>
    %166 = arith.mulf %164, %165 : vector<8x4xf32>
    %c0_102 = arith.constant 0 : index
    %c28_103 = arith.constant 28 : index
    %167 = vector.load %arg14[%c0_102, %c28_103] : memref<8x32xf32, #tpu.memory_space<vmem>>, vector<8x4xf32>
    tpu.vector_store %arg14[%c0_102, %c28_103], %166 {strides = array<i32>} : memref<8x32xf32, #tpu.memory_space<vmem>>, vector<8x4xf32>,
    %c0_104 = arith.constant 0 : index
    %c0_105 = arith.constant 0 : index
    %168 = vector.load %arg14[%c0_104, %c0_105] : memref<8x32xf32, #tpu.memory_space<vmem>>, vector<8x32xf32>
    %c0_106 = arith.constant 0 : index
    %c0_107 = arith.constant 0 : index
    %169 = vector.load %arg8[%c0_106, %c0_107] : memref<32x32xf32, #tpu.memory_space<vmem>>, vector<32x32xf32>
    %cst_108 = arith.constant dense<0.000000e+00> : vector<8x32xf32>
    %170 = tpu.matmul %168, %169, %cst_108 {dimension_numbers = #tpu.dot_dimension_numbers<[1], [0], [0], [1], [0, 0, 1, 1], [], []>} : vector<8x32xf32>, vector<32x32xf32>, vector<8x32xf32> -> vector<8x32xf32>
    %c0_109 = arith.constant 0 : index
    %c0_110 = arith.constant 0 : index
    %171 = vector.load %arg9[%c0_109, %c0_110] : memref<1x32xf32, #tpu.memory_space<vmem>>, vector<1x32xf32>
    %172 = vector.broadcast %171 : vector<1x32xf32> to vector<8x32xf32>
    %173 = arith.addf %170, %172 : vector<8x32xf32>
    %c0_111 = arith.constant 0 : index
    %c0_112 = arith.constant 0 : index
    %c0_113 = arith.constant 0 : index
    %174 = vector.load %arg10[%c0_111, %c0_112, %c0_113] : memref<1x8x32xf32, #tpu.memory_space<vmem>>, vector<1x8x32xf32>
    %175 = vector.shape_cast %174 : vector<1x8x32xf32> to vector<8x32xf32>
    %176 = vector.shape_cast %173 : vector<8x32xf32> to vector<1x8x32xf32>
    tpu.vector_store %arg10[%c0_111, %c0_112, %c0_113], %176 {strides = array<i32>} : memref<1x8x32xf32, #tpu.memory_space<vmem>>, vector<1x8x32xf32>,
    return
  }
  func.func @transform_0(%arg0: i32, %arg1: i32) -> (i32, i32, i32) {
    %c0_i32 = arith.constant 0 : i32
    %c0_i32_0 = arith.constant 0 : i32
    return %arg0, %arg1, %c0_i32 : i32, i32, i32
  }
  func.func @transform_1(%arg0: i32, %arg1: i32) -> (i32, i32, i32) {
    %c0_i32 = arith.constant 0 : i32
    %c0_i32_0 = arith.constant 0 : i32
    %c0_i32_1 = arith.constant 0 : i32
    return %arg0, %c0_i32, %c0_i32_0 : i32, i32, i32
  }
  func.func @transform_2(%arg0: i32, %arg1: i32) -> (i32, i32, i32) {
    %c0_i32 = arith.constant 0 : i32
    %c0_i32_0 = arith.constant 0 : i32
    %c0_i32_1 = arith.constant 0 : i32
    return %arg0, %c0_i32, %c0_i32_0 : i32, i32, i32
  }
  func.func @transform_3(%arg0: i32, %arg1: i32) -> (i32, i32) {
    %c0_i32 = arith.constant 0 : i32
    %c0_i32_0 = arith.constant 0 : i32
    %c0_i32_1 = arith.constant 0 : i32
    return %c0_i32, %c0_i32_0 : i32, i32
  }
  func.func @transform_4(%arg0: i32, %arg1: i32) -> (i32, i32) {
    %c0_i32 = arith.constant 0 : i32
    %c0_i32_0 = arith.constant 0 : i32
    %c0_i32_1 = arith.constant 0 : i32
    return %c0_i32, %c0_i32_0 : i32, i32
  }
  func.func @transform_5(%arg0: i32, %arg1: i32) -> (i32, i32) {
    %c0_i32 = arith.constant 0 : i32
    %c0_i32_0 = arith.constant 0 : i32
    %c0_i32_1 = arith.constant 0 : i32
    return %c0_i32, %c0_i32_0 : i32, i32
  }
  func.func @transform_6(%arg0: i32, %arg1: i32) -> (i32, i32) {
    %c0_i32 = arith.constant 0 : i32
    %c0_i32_0 = arith.constant 0 : i32
    %c0_i32_1 = arith.constant 0 : i32
    return %c0_i32, %c0_i32_0 : i32, i32
  }
  func.func @transform_7(%arg0: i32, %arg1: i32) -> (i32, i32) {
    %c0_i32 = arith.constant 0 : i32
    %c0_i32_0 = arith.constant 0 : i32
    %c0_i32_1 = arith.constant 0 : i32
    return %c0_i32, %c0_i32_0 : i32, i32
  }
  func.func @transform_8(%arg0: i32, %arg1: i32) -> (i32, i32, i32) {
    %c0_i32 = arith.constant 0 : i32
    %c0_i32_0 = arith.constant 0 : i32
    return %arg0, %arg1, %c0_i32 : i32, i32, i32
  }
}

</mosaic_0001>

<bundles_post_ra>
// kernel: tpu_custom_call.1
= control target key start
LH: loop header
LB: loop body
LE: loop exit
PB: predicated region body
PF: predicated region fallthrough
CT: control target
= control target key end

     0   :  { %s4105_s0 = inlined_call_operand.hbm [shape: f32[2,8,32], index: 0, kind: input, shape index: {}]   ;;  %s4106_s1 = inlined_call_operand.hbm [shape: f32[2,16,32], index: 1, kind: input, shape index: {}]   ;;  %s4107_s2 = inlined_call_operand.hbm [shape: f32[2,16,32], index: 2, kind: input, shape index: {}]   ;;  %s4108_s3 = inlined_call_operand.hbm [shape: f32[32,32], index: 3, kind: input, shape index: {}]   ;;  %s4109_s4 = inlined_call_operand.hbm [shape: f32[32,32], index: 4, kind: input, shape index: {}]   ;;  %s4110_s5 = inlined_call_operand.hbm [shape: f32[32,32], index: 5, kind: input, shape index: {}]   ;;  %s4111_s6 = inlined_call_operand.hbm [shape: f32[32,32], index: 6, kind: input, shape index: {}]   ;;  %s4112_s7 = inlined_call_operand.vmem [shape: f32[1,32], index: 7, kind: input, shape index: {}]   ;;  %s4113_s8 = inlined_call_operand.hbm [shape: f32[2,8,32], index: 8, kind: output, shape index: {}]  }
   0x1   :  { %4145 = sst [smem:[#allocation34_spill]] %s4106_s1 }
   0x2   :  { %4146 = sst [smem:[#allocation35_spill]] %s4108_s3 }
   0x3   :  { %4147 = sst [smem:[#allocation36_spill]] %s4110_s5 }
   0x4   :  { %4148 = sst [smem:[#allocation37_spill]] %s4112_s7 }
   0x5   :  { %4149 = sst [smem:[#allocation38_spill]] %s4113_s8 }
   0x6   :  { %13 = vsyncpa [#allocation7], 0 }
   0x7   :  { %15 = vsyncpa [#allocation7 + $0x1], 0 }
   0x8   :  { %16 = vsyncpa [#allocation10], 0 }
   0x9   :  { %18 = vsyncpa [#allocation10 + $0x1], 0 }
   0xa   :  { %19 = vsyncpa [#allocation13], 0 }
   0xb   :  { %20 = vsyncpa [#allocation16], 0 }
   0xc   :  { %21 = vsyncpa [#allocation8], 0 }
   0xd   :  { %23 = vsyncpa [#allocation8 + $0x1], 0  ;;  %s3493_s27 = smov 0   ;;  %s3495_s28 = smov 0  }
   0xe   :  { %s3497_s29 = smov 0   ;;  %s3499_s30 = smov 0  }
   0xf   :  { %s3501_s9 = smov 0   ;;  %s3503_s10 = smov 0  }
  0x10 LB: > { %4150 = sst [smem:[#allocation24_spill]] %s3399_s27  ;;  %s3524_s11 = sadd.s32 4294967295, %s3419_s10   ;;  %s3419_s10 = sphi %s3503_s10, %s29_s10   ;;  %s3415_s9 = sphi %s3501_s9, %s4207_s9   ;;  %s3411_s30 = sphi %s3499_s30, %s4206_s30   ;;  %s3407_s29 = sphi %s3497_s29, %s4202_s29   ;;  %s3403_s28 = sphi %s3495_s28, %s4205_s28   ;;  %s3399_s27 = sphi %s3493_s27, %s4204_s27  }
  0x11   : > { %4151 = sst [smem:[#allocation25_spill]] %s3407_s29  ;;  %s2510_s12 = sadd.s32 4294967294, %s3419_s10  }
  0x12   : > { %4152 = sst [smem:[#allocation26_spill]] %s3411_s30  ;;  %p63_p0 = scmp.ne.s32.totalorder %s3403_s28, %s3399_s27 }
  0x13   : > { %4153 = sst [smem:[#allocation27_spill]] %s3419_s10  ;;  %p4114_p1 = scmp.eq.s32.totalorder %s3524_s11, 0 }
  0x14   : > { %4154 = sst [smem:[#allocation28_spill]] %s3524_s11  ;;  %p252_p3 = scmp.eq.s32.totalorder %s2510_s12, 1 }
  0x15   : > { %p3533_p4 = por %p4114_p1, %p63_p0  ;;  %p2511_p5 = scmp.ge.s32.totalorder %s3419_s10, 1 }
  0x16   : > { %p3538_p6 = por %p252_p3, %p63_p0  ;;  %p259_p7 = scmp.lt.s32.totalorder %s3419_s10, 3 }
  0x17   : > { %s4155_s13 = scalar_select %p3533_p4, 1, 0 }
  0x18   : > { %s4157_s14 = scalar_select %p3538_p6, 1, 0 }
  0x19   : > { %4156 = sst [smem:[#allocation29_spill]] %s4155_s13  ;;  %p3543_p8 = pnand %p2511_p5, %p259_p7 }
  0x1a   : > { %4158 = sst [smem:[#allocation30_spill]] %s4157_s14  ;;  %s3421_s16 = smov [#allocation12]  }
  0x1b   : > { %s4159_s15 = scalar_select %p3543_p8, 1, 0 }
  0x1c   : > { %s271_s17 = sshll.u32 %s3421_s16, 4  ;;  %p2913_p9 = pneg %p3543_p8  ;;  %s3547_s17 = int_to_ptr.vmem [resolvable:$true] %s271_s17 }
  0x1d   : > { %s3422_s19 = smov [#allocation15]   ;;  %s4161_s3 = sld [smem:[#allocation35_spill]] }
  0x1e   : > { %p3554_p11 = pnand %p2913_p9, %p4114_p1  ;;  %s297_s20 = sshll.u32 %s3422_s19, 4  ;;  %s3558_s20 = int_to_ptr.vmem [resolvable:$true] %s297_s20 }
  0x20   : > { %s4160_s18 = scalar_select %p3554_p11, 1, 0 }
  0x21   : > { %p3568_p13 = pneg %p3554_p11 }
  0x23   : > { %s3123_s23 = scalar_lea.hbm %s4161_s3, 512 }
  0x24   : > { %p3124_p12 = scmp.ne.s32.totalorder %s4161_s3, %s3123_s23  ;;  %p3130_p5 = scmp.lt.u32.totalorder %s3123_s23, %s4161_s3 }
  0x25   : > { %s4162_s26 = scalar_select %p3568_p13, 1, 0 }
  0x26   : > { %p3126_p0 = pnand %p3568_p13, %p3124_p12 }
  0x28   : > { %p3127_p3 = pneg %p3126_p0 }
  0x2a   : > { %p3132_p7 = pnand %p3130_p5, %p3127_p3 }
  0x2c   : > { %3135 = shalt.err (!%p3132_p7)
}
  0x2d   : > { %s3136_s19 = scalar_lea.vmem %s3547_s17, 512  ;;  %p3144_p2 = scmp.lt.s32.totalorder %s3547_s17, %s3547_s17 }
  0x2e   : > { %p3137_p9 = scmp.ne.s32.totalorder %s3547_s17, %s3136_s19  ;;  %p3145_p6 = scmp.lt.s32.totalorder %s3136_s19, %s3136_s19 }
  0x30   : > { %p3139_p10 = pnand %p3137_p9, %p3568_p13  ;;  %p3146_p12 = por %p3145_p6, %p3144_p2 }
  0x32   : > { %p3140_p1 = pneg %p3139_p10 }
  0x34   : > { %p3147_p0 = pnand %p3146_p12, %p3140_p1 }
  0x36   : > { %3150 = shalt.err (!%p3147_p0)
}
  0x37   : > { %s4118_s21 = smov 128   ;;  %s4120_s22 = smov 8  }
  0x38   : > { %2916 = dma.hbm_to_vmem [thread:$0]  (!%p3554_p11), %s4161_s3, 512, %s3547_s17, [#allocation13], %s4118_s21, %s4118_s21, %s4120_s22  }
  0x39   : > { %s4163_s5 = sld [smem:[#allocation36_spill]] }
  0x3f   : > { %s3151_s16 = scalar_lea.hbm %s4163_s5, 512 }
  0x40   : > { %p3152_p1 = scmp.ne.s32.totalorder %s4163_s5, %s3151_s16  ;;  %p3158_p10 = scmp.lt.u32.totalorder %s3151_s16, %s4163_s5 }
  0x42   : > { %p3154_p2 = pnand %p3152_p1, %p3568_p13 }
  0x44   : > { %p3155_p6 = pneg %p3154_p2 }
  0x46   : > { %p3160_p3 = pnand %p3158_p10, %p3155_p6 }
  0x48   : > { %3163 = shalt.err (!%p3160_p3)
}
  0x49   : > { %s3164_s17 = scalar_lea.vmem %s3558_s20, 512  ;;  %p3172_p12 = scmp.lt.s32.totalorder %s3558_s20, %s3558_s20 }
  0x4a   : > { %p3165_p5 = scmp.ne.s32.totalorder %s3558_s20, %s3164_s17  ;;  %p3173_p0 = scmp.lt.s32.totalorder %s3164_s17, %s3164_s17 }
  0x4c   : > { %p3167_p7 = pnand %p3165_p5, %p3568_p13  ;;  %p3174_p1 = por %p3173_p0, %p3172_p12 }
  0x4e   : > { %p3168_p9 = pneg %p3167_p7 }
  0x50   : > { %p3175_p2 = pnand %p3174_p1, %p3168_p9 }
  0x52   : > { %3178 = shalt.err (!%p3175_p2)
}
  0x53   : > { %2922 = dma.hbm_to_vmem [thread:$0]  (!%p3554_p11), %s4163_s5, 512, %s3558_s20, [#allocation16], %s4118_s21, %s4118_s21, %s4120_s22  }
  0x54   : > { %s41_s14 = sadd.s32 1, %s3415_s9  ;;  %s50_s23 = sadd.s32 1, %s3407_s29 }
  0x55   : > { %p43_p6 = scmp.ge.s32.totalorder %s41_s14, 2  ;;  %p57_p10 = scmp.ne.s32.totalorder %s3407_s29, %s3403_s28 }
  0x56   : > { %p58_p3 = scmp.eq.s32.totalorder %s3419_s10, 0  ;;  %p2944_p5 = scmp.lt.s32.totalorder %s3419_s10, 2 }
  0x57   : > { %s4209_s14 = smov (%p43_p6, %s41_s14), 0  ;;  %p4165_p9 = scmp.eq.s32.totalorder %s3524_s11, 1 }
  0x58   : > { %4164 = sst [smem:[#allocation31_spill]] %s4209_s14  ;;  %p59_p7 = por %p58_p3, %p57_p10 }
  0x59   : > { %p3628_p12 = por %p4165_p9, %p57_p10  ;;  %s45_s25 = ssub.s32 %s3415_s9, %s4209_s14 }
  0x5a   : > { %s3635_s20 = sand.u32 1, %s3407_s29   ;;  %p48_p0 = scmp.eq.s32.totalorder %s45_s25, 0 }
  0x5b   : > { %s4166_s24 = scalar_select %p3628_p12, 1, 0 }
  0x5c   : > { %p3637_p1 = pnand %p2944_p5, %p59_p7  ;;  %s346_s16 = sand.u32 1, %s3419_s10  }
  0x5d   : > { %4167 = sst [smem:[#allocation32_spill]] %s4166_s24  ;;  %s4123_s19 = sshll.u32 %s3635_s20, 4 }
  0x5e   : > { %s4168_s12 = scalar_select %p3637_p1, 1, 0 }
  0x5f   : > { %s3644_s17 = scalar_select %p48_p0, %s3407_s29, %s50_s23  }
  0x60   : > { %s4124_s8 = sshll.u32 %s3415_s9, 8  ;;  %s4170_s1 = sld [smem:[#allocation34_spill]] }
  0x61   : > { %4169 = sst [smem:[#allocation33_spill]] %s3644_s17  ;;  %s350_s25 = scalar_lea.vmem [#allocation9], %s4123_s19 }
  0x62   : > { %s357_s3 = sshll.u32 %s350_s25, 4  ;;  %s3658_s5 = scalar_lea.sflag [#allocation10], %s346_s16  ;;  %s3656_s3 = int_to_ptr.vmem [resolvable:$true] %s357_s3 }
  0x63   : > { %p3664_p6 = pneg %p3637_p1 }
  0x65   : > { %s4171_s14 = scalar_select %p3664_p6, 1, 0 }
  0x66   : > { %s3652_s22 = scalar_lea.hbm %s4170_s1, %s4124_s8  ;;  %s3184_s19 = scalar_lea.hbm %s4170_s1, 512 }
  0x67   : > { %s3179_s23 = scalar_lea.hbm %s3652_s22, 256  ;;  %p3185_p5 = scmp.lt.u32.totalorder %s3652_s22, %s4170_s1 }
  0x68   : > { %p3180_p2 = scmp.ne.s32.totalorder %s3652_s22, %s3179_s23  ;;  %p3186_p7 = scmp.lt.u32.totalorder %s3184_s19, %s3179_s23 }
  0x69   : > { %p3188_p0 = scmp.lt.u32.totalorder %s3179_s23, %s3652_s22 }
  0x6a   : > { %p3182_p10 = pnand %p3664_p6, %p3180_p2  ;;  %p3187_p9 = por %p3186_p7, %p3185_p5 }
  0x6c   : > { %p3183_p3 = pneg %p3182_p10  ;;  %p3189_p12 = por %p3188_p0, %p3187_p9 }
  0x6e   : > { %p3190_p4 = pnand %p3189_p12, %p3183_p3 }
  0x70   : > { %3193 = shalt.err (!%p3190_p4)
}
  0x71   : > { %s3194_s16 = scalar_lea.vmem %s3656_s3, 256  ;;  %s3425_s21 = smov [#allocation9]  }
  0x72   : > { %p3195_p2 = scmp.ne.s32.totalorder %s3656_s3, %s3194_s16  ;;  %s3199_s27 = sshll.u32 %s3425_s21, 4  ;;  %s3200_s27 = int_to_ptr.vmem [resolvable:$false] %s3199_s27 }
  0x73   : > { %s3201_s8 = scalar_lea.vmem %s3200_s27, 512  ;;  %p3202_p11 = scmp.lt.s32.totalorder %s3656_s3, %s3200_s27 }
  0x74   : > { %p3197_p10 = pnand %p3195_p2, %p3664_p6  ;;  %p3203_p13 = scmp.lt.s32.totalorder %s3201_s8, %s3194_s16 }
  0x76   : > { %p3198_p8 = pneg %p3197_p10  ;;  %p3204_p5 = por %p3203_p13, %p3202_p11 }
  0x78   : > { %p3205_p7 = pnand %p3204_p5, %p3198_p8 }
  0x7a   : > { %3208 = shalt.err (!%p3205_p7)
}
  0x7b   : > { %s4172_s19 = smov 8   ;;  %s4173_s23 = smov 128  }
  0x7c   : > { %2932 = dma.hbm_to_vmem [thread:$0]  (!%p3637_p1), %s3652_s22, 256, %s3656_s3, %s3658_s5, %s4173_s23, %s4173_s23, %s4172_s19  }
  0x7d   : > { %s4174_s25 = sshll.u32 %s3415_s9, 8  ;;  %s4175_s27 = sshll.u32 %s3635_s20, 4 }
  0x7e   : > { %s3696_s16 = scalar_lea.hbm %s4107_s2, %s4174_s25  ;;  %s3700_s8 = scalar_lea.vmem [#allocation11], %s4175_s27 }
  0x7f   : > { %s378_s17 = sshll.u32 %s3700_s8, 4  ;;  %s3426_s29 = smov [#allocation14]   ;;  %s3754_s17 = int_to_ptr.vmem [resolvable:$true] %s378_s17 }
  0x80   : > { %s284_s10 = sshll.u32 %s3426_s29, 4  ;;  %s3427_s7 = smov [#allocation17]   ;;  %s285_s10 = int_to_ptr.vmem [resolvable:$true] %s284_s10 }
  0x81   : > { %s310_s24 = sshll.u32 %s3427_s7, 4  ;;  %s3209_s3 = scalar_lea.hbm %s4109_s4, 512  ;;  %s311_s24 = int_to_ptr.vmem [resolvable:$true] %s310_s24 }
  0x82   : > { %p3210_p4 = scmp.ne.s32.totalorder %s4109_s4, %s3209_s3  ;;  %p4176_p8 = scmp.ne.s32.totalorder %s4162_s26, 0 }
  0x83   : > { %p3216_p12 = scmp.lt.u32.totalorder %s3209_s3, %s4109_s4 }
  0x84   : > { %p3212_p11 = pnand %p3210_p4, %p4176_p8 }
  0x86   : > { %p3213_p13 = pneg %p3212_p11 }
  0x88   : > { %p3218_p3 = pnand %p3216_p12, %p3213_p13 }
  0x8a   : > { %3221 = shalt.err (!%p3218_p3)
}
  0x8b   : > { %s3222_s29 = scalar_lea.vmem %s285_s10, 512  ;;  %p3230_p10 = scmp.lt.s32.totalorder %s285_s10, %s285_s10 }
  0x8c   : > { %p3223_p9 = scmp.ne.s32.totalorder %s285_s10, %s3222_s29  ;;  %p3231_p5 = scmp.lt.s32.totalorder %s3222_s29, %s3222_s29 }
  0x8e   : > { %p3225_p0 = pnand %p3223_p9, %p4176_p8  ;;  %p3232_p7 = por %p3231_p5, %p3230_p10 }
  0x90   : > { %p3226_p2 = pneg %p3225_p0 }
  0x92   : > { %p3233_p1 = pnand %p3232_p7, %p3226_p2 }
  0x94   : > { %3236 = shalt.err (!%p3233_p1)
}
  0x95   : > { %p4177_p4 = scmp.ne.s32.totalorder %s4160_s18, 0  ;;  %s3237_s21 = scalar_lea.hbm %s4111_s6, 512 }
  0x96   : > { %p3238_p11 = scmp.ne.s32.totalorder %s4111_s6, %s3237_s21  ;;  %p3244_p12 = scmp.lt.u32.totalorder %s3237_s21, %s4111_s6 }
  0x97   : > { %2919 = dma.hbm_to_vmem [thread:$0]  (!%p4177_p4), %s4109_s4, 512, %s285_s10, [#allocation13], %s4173_s23, %s4173_s23, %s4172_s19  }
  0x98   : > { %p3240_p1 = pnand %p3238_p11, %p4176_p8 }
  0x9a   : > { %p3241_p13 = pneg %p3240_p1 }
  0x9c   : > { %p3246_p3 = pnand %p3244_p12, %p3241_p13 }
  0x9e   : > { %3249 = shalt.err (!%p3246_p3)
}
  0x9f   : > { %s3250_s25 = scalar_lea.vmem %s311_s24, 512  ;;  %p3258_p10 = scmp.lt.s32.totalorder %s311_s24, %s311_s24 }
  0xa0   : > { %p3251_p9 = scmp.ne.s32.totalorder %s311_s24, %s3250_s25  ;;  %p3259_p5 = scmp.lt.s32.totalorder %s3250_s25, %s3250_s25 }
  0xa2   : > { %p3253_p0 = pnand %p3251_p9, %p4176_p8  ;;  %p3260_p7 = por %p3259_p5, %p3258_p10 }
  0xa4   : > { %p3254_p2 = pneg %p3253_p0 }
  0xa6   : > { %p3261_p6 = pnand %p3260_p7, %p3254_p2 }
  0xa8   : > { %3264 = shalt.err (!%p3261_p6)
}
  0xa9   : > { %2925 = dma.hbm_to_vmem [thread:$0]  (!%p4177_p4), %s4111_s6, 512, %s311_s24, [#allocation16], %s4173_s23, %s4173_s23, %s4172_s19  }
  0xaa   : > { %s2517_s26 = sshll.u32 %s3635_s20, 3  ;;  %s2518_s7 = sshll.u32 %s3415_s9, 7 }
  0xab   : > { %s3750_s13 = scalar_lea.hbm %s4105_s0, %s2518_s7  ;;  %s331_s18 = scalar_lea.vmem [#allocation6], %s2517_s26 }
  0xac   : > { %s339_s21 = sshll.u32 %s331_s18, 4  ;;  %s328_s27 = scalar_lea.sflag [#allocation7], %s3635_s20  ;;  %s340_s21 = int_to_ptr.vmem [resolvable:$true] %s339_s21 }
  0xad   : > { %s3265_s3 = scalar_lea.hbm %s3750_s13, 128  ;;  %p4178_p8 = scmp.ne.s32.totalorder %s4171_s14, 0 }
  0xae   : > { %p3266_p6 = scmp.ne.s32.totalorder %s3750_s13, %s3265_s3  ;;  %s3270_s1 = scalar_lea.hbm %s4105_s0, 256 }
  0xaf   : > { %p3271_p1 = scmp.lt.u32.totalorder %s3750_s13, %s4105_s0  ;;  %p3272_p13 = scmp.lt.u32.totalorder %s3270_s1, %s3265_s3 }
  0xb0   : > { %p3268_p4 = pnand %p3266_p6, %p4178_p8  ;;  %p3274_p3 = scmp.lt.u32.totalorder %s3265_s3, %s3750_s13 }
  0xb1   : > { %p3273_p12 = por %p3272_p13, %p3271_p1 }
  0xb2   : > { %p3269_p11 = pneg %p3268_p4 }
  0xb3   : > { %p3275_p9 = por %p3274_p3, %p3273_p12 }
  0xb5   : > { %p3276_p0 = pnand %p3275_p9, %p3269_p11 }
  0xb7   : > { %3279 = shalt.err (!%p3276_p0)
}
  0xb8   : > { %s3280_s20 = scalar_lea.vmem %s340_s21, 128  ;;  %s3428_s10 = smov [#allocation6]  }
  0xb9   : > { %p3281_p2 = scmp.ne.s32.totalorder %s340_s21, %s3280_s20  ;;  %s3285_s29 = sshll.u32 %s3428_s10, 4  ;;  %s3286_s29 = int_to_ptr.vmem [resolvable:$false] %s3285_s29 }
  0xba   : > { %s3287_s26 = scalar_lea.vmem %s3286_s29, 256  ;;  %p3288_p7 = scmp.lt.s32.totalorder %s340_s21, %s3286_s29 }
  0xbb   : > { %p3283_p10 = pnand %p3281_p2, %p4178_p8  ;;  %p3289_p6 = scmp.lt.s32.totalorder %s3287_s26, %s3280_s20 }
  0xbd   : > { %p3284_p5 = pneg %p3283_p10  ;;  %p3290_p4 = por %p3289_p6, %p3288_p7 }
  0xbf   : > { %p3291_p1 = pnand %p3290_p4, %p3284_p5 }
  0xc1   : > { %3294 = shalt.err (!%p3291_p1)
}
  0xc2   : > { %p4179_p13 = scmp.ne.s32.totalorder %s4168_s12, 0  ;;  %s3295_s7 = scalar_lea.hbm %s3696_s16, 256 }
  0xc3   : > { %p3296_p11 = scmp.ne.s32.totalorder %s3696_s16, %s3295_s7  ;;  %s3300_s18 = scalar_lea.hbm %s4107_s2, 512 }
  0xc4   : > { %2929 = dma.hbm_to_vmem [thread:$0]  (!%p4179_p13), %s3750_s13, 128, %s340_s21, %s328_s27  }
  0xc5   : > { %p3298_p12 = pnand %p3296_p11, %p4178_p8  ;;  %p3301_p9 = scmp.lt.u32.totalorder %s3696_s16, %s4107_s2 }
  0xc6   : > { %p3302_p0 = scmp.lt.u32.totalorder %s3300_s18, %s3295_s7  ;;  %p3304_p10 = scmp.lt.u32.totalorder %s3295_s7, %s3696_s16 }
  0xc7   : > { %p3299_p3 = pneg %p3298_p12 }
  0xc8   : > { %p3303_p2 = por %p3302_p0, %p3301_p9 }
  0xca   : > { %p3305_p5 = por %p3304_p10, %p3303_p2 }
  0xcc   : > { %p3306_p7 = pnand %p3305_p5, %p3299_p3 }
  0xce   : > { %3309 = shalt.err (!%p3306_p7)
}
  0xcf   : > { %s3310_s13 = scalar_lea.vmem %s3754_s17, 256  ;;  %s3429_s21 = smov [#allocation11]  }
  0xd0   : > { %p3311_p6 = scmp.ne.s32.totalorder %s3754_s17, %s3310_s13  ;;  %s3315_s27 = sshll.u32 %s3429_s21, 4  ;;  %s3316_s27 = int_to_ptr.vmem [resolvable:$false] %s3315_s27 }
  0xd1   : > { %s3317_s22 = scalar_lea.vmem %s3316_s27, 512  ;;  %p3318_p11 = scmp.lt.s32.totalorder %s3754_s17, %s3316_s27 }
  0xd2   : > { %p3313_p4 = pnand %p3311_p6, %p4178_p8  ;;  %p3319_p12 = scmp.lt.s32.totalorder %s3317_s22, %s3310_s13 }
  0xd4   : > { %p3314_p1 = pneg %p3313_p4  ;;  %p3320_p9 = por %p3319_p12, %p3318_p11 }
  0xd6   : > { %p3321_p0 = pnand %p3320_p9, %p3314_p1 }
  0xd8   : > { %3324 = shalt.err (!%p3321_p0)
}
  0xd9   : > { %2935 = dma.hbm_to_vmem [thread:$0]  (!%p4179_p13), %s3696_s16, 256, %s3754_s17, %s3658_s5, %s4173_s23, %s4173_s23, %s4172_s19  }
  0xda   : > { %p4180_p8 = scmp.ne.s32.totalorder %s4159_s15, 0 }
  0xdb   : > { %s4181_s14 = sld [smem:[#allocation29_spill]] (!%p4180_p8)  ;;  %s3802_s1 = sand.u32 (!%p4180_p8), 1, %s3403_s28  }
  0xdc   : > { %390 = sbr.rel (%p4180_p8) target bundleno = 4066 (0xfe2), region = 52  ;;  %s2526_s8 = sshll.u32 (!%p4180_p8), %s3802_s1, 3 }
  0xdd   : > { %s393_s25 = scalar_lea.sflag (!%p4180_p8), [#allocation7], %s3802_s1  ;;  %s3808_s12 = scalar_lea.vmem (!%p4180_p8), [#allocation6], %s2526_s8 }
  0xe1   : > { %p4182_p3 = scmp.ne.s32.totalorder (!%p4180_p8), %s4181_s14, 0 }
  0xe3   : > { %3378 = dma.done.wait (%p4182_p3), %s393_s25, 128  }
  0xe4   : > { %3380 = vsyncadd (%p4182_p3), %s393_s25, 4294967168  ;;  %s4183_s5 = sld [smem:[#allocation28_spill]]  ;;  %s2527_s17 = sshll.u32 %s3802_s1, 4 }
  0xe5   : > { %s405_s23 = scalar_lea.vmem [#allocation9], %s2527_s17 }
  0xea   : > { %s401_s15 = sand.u32 1, %s4183_s5  }
  0xeb   : > { %s402_s19 = scalar_lea.sflag [#allocation10], %s401_s15 }
  0xec   : > { %3382 = dma.done.wait (%p4182_p3), %s402_s19, 512  }
  0xed   : > { %3384 = vsyncadd (%p4182_p3), %s402_s19, 4294966784  ;;  %s3820_s16 = scalar_lea.vmem [#allocation11], %s2527_s17  ;;  %p4184_p13 = scmp.eq.s32.totalorder %s4183_s5, 0 }
  0xef   : > { %3386 = dma.done.wait (%p4184_p13), [#allocation13], 1024   ;;  %p4185_p2 = pmov %p4184_p13 }
  0xf1   : > { %3388 = vsyncadd (%p4185_p2), [#allocation13], 4294966272  ;;  %p4186_p10 = pmov %p4185_p2 }
  0xf2   : > { %p4187_p5 = pmov %p4185_p2 }
  0xf3   : > { %3390 = dma.done.wait (%p4186_p10), [#allocation16], 1024  }
  0xf4   : > { %3392 = vsyncadd (%p4187_p5), [#allocation16], 4294966272  ;;  %vm483_vm0 = vcmask 261120   ;;  %v479_v0 = vld [vmem:[#allocation14] sm:$0xff]  ;;  %v480_v1 = vld [vmem:[#allocation14 + $0x8] sm:$0xff]  ;;  %v3430_v14 = vmov 0.0|0.0  }
  0xf5   : > { %v481_v2 = vld [vmem:[#allocation14 + $0x10] sm:$0xff]  ;;  %v2805_v3 = vpack.c.bf16 %v480_v1, %v479_v0  ;;  %v482_v4 = vld [vmem:[#allocation14 + $0x18] sm:$0xff]  ;;  %v567_v7 = vld [vmem:[#allocation15] sm:$0xff]  ;;  %vm3431_vm1 = vmmov 0   ;;  %v3432_v18 = vmov 0.0   ;;  %vm741_vm2 = vcmask 31744  }
  0xf6   : > { %v477_v5 = vld [vmem:[%s405_s23] sm:$0xff]  ;;  %v2809_v6 = vpack.c.bf16 %v482_v4, %v481_v2  ;;  %v568_v8 = vld [vmem:[#allocation15 + $0x8] sm:$0xff]  ;;  %v660_v16 = vld [vmem:[#allocation12 + $0x18] sm:$0xff]  ;;  %s3433_s20 = smov 124   ;;  %vm821_vm4 = vcmask 130048   ;;  %s3434_s10 = smov 120  }
  0xf7   : > { %2657 = vmatprep.mubr.msk.f32.mxu0 %vm483_vm0, %v477_v5  ;;  %2806 = vmatprep.subr.bf16.mxu0 %v2805_v3  ;;  %v657_v9 = vld [vmem:[#allocation12] sm:$0xff]  ;;  %v658_v10 = vld [vmem:[#allocation12 + $0x8] sm:$0xff]  ;;  %v2813_v11 = vpack.c.bf16 %v568_v8, %v567_v7  ;;  %v659_v15 = vld [vmem:[#allocation12 + $0x10] sm:$0xff]  ;;  %s3435_s29 = smov 116   ;;  %s3436_s26 = smov 112   ;;  %vm1099_vm5 = vcmask 64544  }
  0xf8   : > { %2808 = vmatpush3.bf16.msra.mxu0 %v2805_v3  ;;  %v478_v12 = vld [vmem:[%s405_s23 + $0x8] sm:$0xff]  ;;  %v2822_v13 = vpack.c.bf16 %v658_v10, %v657_v9  ;;  %v2825_v17 = vpack.c.bf16 %v660_v16, %v659_v15  ;;  %v569_v20 = vld [vmem:[#allocation15 + $0x10] sm:$0xff]  ;;  %vm3853_vm3 = vmpackc.low %vm741_vm2, %vm741_vm2  ;;  %s3437_s7 = smov 108   ;;  %s3438_s30 = smov 104   ;;  %vm1290_vm6 = vcmask 97344   ;;  %vm1481_vm7 = vcmask 130144  }
  0xf9   : > { %2810 = vmatprep.subr.bf16.mxu0 %v2809_v6  ;;  %2814 = vmatprep.subr.bf16.mxu1 %v2813_v11  ;;  %v656_v19 = vld [vmem:[%s3808_s12] sm:$0xff]  ;;  %v565_v23 = vld [vmem:[%s3820_s16] sm:$0xff]  ;;  %s3439_s11 = smov 100   ;;  %s3440_s18 = smov 8   ;;  %vm1672_vm8 = vcmask 162944   ;;  %vm1863_vm9 = vcmask 195744  }
  0xfa   : > { %2816 = vmatpush3.bf16.msra.mxu1 %v2813_v11  ;;  %v570_v21 = vld [vmem:[#allocation15 + $0x18] sm:$0xff]  ;;  %2668 = vmatprep.mubr.msk.f32.mxu1 %vm483_vm0, %v565_v23  ;;  %s3441_s3 = smov 4   ;;  %s3442_s24 = smov 20   ;;  %vm2054_vm10 = vcmask 228544   ;;  %vm2245_vm11 = vcmask 261344  }
  0xfb   : > { %v2817_v22 = vpack.c.bf16 %v570_v21, %v569_v20  ;;  %v566_v24 = vld [vmem:[%s3820_s16 + $0x8] sm:$0xff]  ;;  %s3443_s13 = smov 12   ;;  %s3444_s21 = smov 16  }
  0xfc   : > { %2812 = vmatpush3.bf16.msra.mxu0 %v2809_v6  ;;  %s3445_s27 = smov 24   ;;  %s4190_s22 = sld [smem:[#allocation26_spill]] }
  0xfd   : > { %2821 = vmatprep.subr.bf16.mxu0 %v3430_v14  ;;  %2818 = vmatprep.subr.bf16.mxu1 %v2817_v22  ;;  %s3446_s14 = smov 28   ;;  %s4191_s25 = sld [smem:[#allocation32_spill]] }
  0xfe   : > { %2820 = vmatpush3.bf16.msra.mxu1 %v2817_v22  ;;  %s4192_s15 = sld [smem:[#allocation37_spill]]  ;;  %s472_s19 = scalar_lea.vmem [#allocation18], %s2526_s8 }
  0xff   : > { %2658 = vmatmul.mubr.msk.f32.vlgmr.msra.gmra.mrb[0].mxu0 %vm483_vm0, %v478_v12  ;;  %2827 = vmatprep.subr.bf16.mxu1 %v3430_v14  ;;  %s2348_s23 = sshll.u32 %s472_s19, 4  ;;  %s3447_s8 = smov [#allocation18]   ;;  %s4057_s23 = int_to_ptr.vmem [resolvable:$true] %s2348_s23 }
 0x100   : > { %2823 = vmatpush3.bf16.msra.mxu0 %v2822_v13  ;;  %2679 = vmatprep.mubr.msk.f32.mxu0 %vm3431_vm1, %v3432_v18 }
 0x101   : > { %2824 = vmatprep.subr.bf16.mxu0 %v3430_v14  ;;  %2669 = vmatmul.mubr.msk.f32.vlgmr.msra.gmra.mrb[0].mxu1 %vm483_vm0, %v566_v24 }
 0x102   : > { %2686 = vmatprep.mubr.msk.f32.mxu1 %vm3431_vm1, %v3432_v18  ;;  %s2574_s17 = sshll.u32 %s4190_s22, 7 }
 0x103   : > { %p4195_p6 = scmp.ne.s32.totalorder %s4191_s25, 0 }
 0x104   : > { %2826 = vmatpush3.bf16.msra.mxu0 %v2825_v17 }
 0x105   : > { %2838 = vmatprep.subr.bf16.mxu0 %v3430_v14 }
 0x107   : > { %2680 = vmatmul.mubr.msk.f32.vlgmr.msra.gmra.mrb[2].mxu0 %vm483_vm0, %v656_v19 }
 0x108   : > { %2707 = vmatprep.mubr.msk.f32.mxu0 %vm3431_vm1, %v3432_v18 }
 0x1d2   : > { %v2659_v25 = vpop.f32.mrb[0].mxu0 }
 0x1d3   : > { %653 = vst.msk [vmem:[#allocation3 + $0x8] sm:$0xff] %vm483_vm0, %v2659_v25  ;;  %v556_v26 = vpop.f32.mrb[1].mxu0 }
 0x1d4   : > { %652 = vst.msk [vmem:[#allocation3] sm:$0xff] %vm483_vm0, %v556_v26  ;;  %v2670_v35 = vpop.f32.mrb[0].mxu1 }
 0x1d5   : > { %655 = vst.msk [vmem:[#allocation4 + $0x8] sm:$0xff] %vm483_vm0, %v2670_v35  ;;  %v643_v36 = vpop.f32.mrb[1].mxu1 }
 0x1d6   : > { %654 = vst.msk [vmem:[#allocation4] sm:$0xff] %vm483_vm0, %v643_v36 }
 0x1da   : > { %v731_v27 = vpop.f32.mrb[2].mxu0  ;;  %v738_v28 = vld [vmem:[#allocation3 + $0x8] sm:$0xff] }
 0x1db   : > { %735 = vst.msk [vmem:[#allocation2] sm:$0xff] %vm483_vm0, %v731_v27  ;;  %v2681_v29 = vpop.f32.mrb[3].mxu0  ;;  %v737_v30 = vld [vmem:[#allocation3] sm:$0xff] }
 0x1dc   : > { %v2828_v32 = vpack.c.bf16 %v738_v28, %v737_v30  ;;  %v3857_v33 = vpack.i.bf16 %v738_v28, %v737_v30  ;;  %v740_v38 = vld [vmem:[#allocation4 + $0x8] sm:$0xff] }
 0x1dd   : > { %v739_v37 = vld [vmem:[#allocation4] sm:$0xff] }
 0x1de   : > { %2830 = vmatpush3.bf16.xpose.msk.msra.mxu1 %vm3853_vm3, %v2828_v32  ;;  %v2832_v39 = vpack.c.bf16 %v740_v38, %v739_v37  ;;  %v3871_v40 = vpack.i.bf16 %v740_v38, %v739_v37 }
 0x1df   : > { %2831 = vmatprep.subr.bf16.mxu1 %v3430_v14 }
 0x1e2   : > { %v3862_v34 = vld [vmem:[#allocation2] sm:$0xff] }
 0x1e3   : > { %916 = vrot.lane.b32.xlu1 %v3862_v34, %s3433_s20 }
 0x1e5   : > { %2687 = vmatmul.mubr.msk.f32.vlgmr.msra.gmra.mrb[2].mxu1 %vm741_vm2, %v3862_v34 }
 0x1e6   : > { %2693 = vmatprep.mubr.msk.f32.mxu1 %vm3431_vm1, %v3432_v18  ;;  %2833 = vmatpush3.bf16.msra.mxu1 %v2832_v39 }
 0x1e7   : > { %2834 = vmatprep.subr.bf16.mxu1 %v3430_v14 }
 0x255   : > { %v917_v56 = vpop.permute.xlu1 %916 }
 0x2b8   : > { %v817_v41 = vpop.f32.mrb[2].mxu1 }
 0x2b9   : > { %v2688_v42 = vpop.f32.mrb[3].mxu1  ;;  %v822_v43 = vsel %vm821_vm4, %v817_v41, -inf }
 0x2ba   : > { %823 = vmax.xlane.f32.xlu0 %v822_v43 }
 0x2d0   : > { %3022 = vrot.lane.b32.xlu0 %v3857_v33, %s3433_s20 }
 0x2d4   : > { %3027 = vrot.lane.b32.xlu0 %v3871_v40, %s3433_s20 }
 0x2d8   : > { %3032 = vrot.lane.b32.xlu0 %v3857_v33, %s3434_s10 }
 0x2dc   : > { %1107 = vrot.lane.b32.xlu0 %v3862_v34, %s3434_s10 }
 0x347   : > { %v824_v44 = vpop.xlane.xlu0 %823 }
 0x348   : > { %v825_v45 = vsub.f32 %v817_v41, %v824_v44 }
 0x34a   : > { %v826_v46 = vmul.f32 1.442695, %v825_v45 }
 0x34b   : > { %v3023_v47 = vpop.permute.xlu0 %3022 }
 0x34c   : > { %3091 = vpow2.f32 %v826_v46  ;;  %v3025_v51 = vunpack.i.h.bf16 %v3023_v47  ;;  %v3024_v52 = vunpack.i.l.bf16 %v3023_v47 }
 0x34e   : > { %v2835_v55 = vpack.c.bf16 %v3025_v51, %v3024_v52 }
 0x34f   : > { %v3028_v48 = vpop.permute.xlu0 %3027 }
 0x350   : > { %v3030_v49 = vunpack.i.h.bf16 %v3028_v48  ;;  %v3029_v50 = vunpack.i.l.bf16 %v3028_v48 }
 0x352   : > { %v2839_v53 = vpack.c.bf16 %v3030_v49, %v3029_v50 }
 0x353   : > { %v3033_v5 = vpop.permute.xlu0 %3032 }
 0x354   : > { %2840 = vmatpush3.bf16.msra.mxu0 %v2839_v53  ;;  %v3035_v6 = vunpack.i.h.bf16 %v3033_v5  ;;  %v3034_v7 = vunpack.i.l.bf16 %v3033_v5 }
 0x355   : > { %2841 = vmatprep.subr.bf16.mxu0 %v3430_v14 }
 0x356   : > { %v3882_v54 = vpop.eup %3091  ;;  %v2842_v9 = vpack.c.bf16 %v3035_v6, %v3034_v7 }
 0x357   : > { %2694 = vmatmul.mubr.msk.f32.vlgmr.msra.gmra.mrb[4].mxu1 %vm821_vm4, %v3882_v54  ;;  %v1108_v10 = vpop.permute.xlu0 %1107 }
 0x358   : > { %2837 = vmatpush3.bf16.xpose.msk.msra.mxu1 %vm3853_vm3, %v2835_v55  ;;  %2700 = vmatprep.mubr.msk.f32.mxu1 %vm3431_vm1, %v3432_v18 }
 0x359   : > { %2845 = vmatprep.subr.bf16.mxu1 %v3430_v14 }
 0x35f   : > { %2701 = vmatmul.mubr.msk.f32.vlgmr.msra.gmra.mrb[6].mxu1 %vm741_vm2, %v917_v56 }
 0x360   : > { %2721 = vmatprep.mubr.msk.f32.mxu1 %vm3431_vm1, %v3432_v18 }
 0x42a   : > { %v3894_v57 = vpop.f32.mrb[4].mxu1 }
 0x42b   : > { %v2695_v58 = vpop.f32.mrb[5].mxu1 }
 0x432   : > { %v996_v59 = vpop.f32.mrb[6].mxu1 }
 0x433   : > { %v2702_v60 = vpop.f32.mrb[7].mxu1  ;;  %v1000_v61 = vsel %vm821_vm4, %v996_v59, -inf }
 0x434   : > { %1001 = vmax.xlane.f32.xlu1 %v1000_v61 }
 0x445   : > { %3037 = vrot.lane.b32.xlu1 %v3871_v40, %s3434_s10  ;;  %s4193_s10 = sld [smem:[#allocation38_spill]] }
 0x449   : > { %3042 = vrot.lane.b32.xlu1 %v3857_v33, %s3435_s29 }
 0x44d   : > { %1298 = vrot.lane.b32.xlu1 %v3862_v34, %s3435_s29 }
 0x4c1   : > { %v1002_v62 = vpop.xlane.xlu1 %1001 }
 0x4c2   : > { %v1003_v63 = vsub.f32 %v996_v59, %v1002_v62 }
 0x4c4   : > { %v1004_v0 = vmul.f32 1.442695, %v1003_v63 }
 0x4c5   : > { %v3038_v1 = vpop.permute.xlu1 %3037 }
 0x4c6   : > { %3093 = vpow2.f32 %v1004_v0  ;;  %v3040_v2 = vunpack.i.h.bf16 %v3038_v1  ;;  %v3039_v3 = vunpack.i.l.bf16 %v3038_v1 }
 0x4c8   : > { %v2846_v4 = vpack.c.bf16 %v3040_v2, %v3039_v3 }
 0x4c9   : > { %v3043_v25 = vpop.permute.xlu1 %3042 }
 0x4ca   : > { %2847 = vmatpush3.bf16.msra.mxu1 %v2846_v4  ;;  %v3045_v26 = vunpack.i.h.bf16 %v3043_v25  ;;  %v3044_v27 = vunpack.i.l.bf16 %v3043_v25 }
 0x4cb   : > { %2848 = vmatprep.subr.bf16.mxu1 %v3430_v14 }
 0x4cc   : > { %v2849_v29 = vpack.c.bf16 %v3045_v26, %v3044_v27 }
 0x4cd   : > { %v1299_v30 = vpop.permute.xlu1 %1298 }
 0x4d0   : > { %v3904_v8 = vpop.eup %3093 }
 0x4d1   : > { %2708 = vmatmul.mubr.msk.f32.vlgmr.msra.gmra.mrb[4].mxu0 %vm821_vm4, %v3904_v8 }
 0x4d2   : > { %2844 = vmatpush3.bf16.xpose.msk.msra.mxu0 %vm3853_vm3, %v2842_v9  ;;  %2714 = vmatprep.mubr.msk.f32.mxu0 %vm3431_vm1, %v3432_v18 }
 0x4d3   : > { %2852 = vmatprep.subr.bf16.mxu0 %v3430_v14 }
 0x4d9   : > { %2715 = vmatmul.mubr.msk.f32.vlgmr.msra.gmra.mrb[6].mxu0 %vm741_vm2, %v1108_v10 }
 0x4da   : > { %2735 = vmatprep.mubr.msk.f32.mxu0 %vm3431_vm1, %v3432_v18 }
 0x5a4   : > { %v3916_v11 = vpop.f32.mrb[4].mxu0 }
 0x5a5   : > { %v2709_v12 = vpop.f32.mrb[5].mxu0 }
 0x5ac   : > { %v1187_v13 = vpop.f32.mrb[6].mxu0 }
 0x5ad   : > { %v2716_v15 = vpop.f32.mrb[7].mxu0  ;;  %v1191_v16 = vsel %vm821_vm4, %v1187_v13, -inf }
 0x5ae   : > { %1192 = vmax.xlane.f32.xlu0 %v1191_v16 }
 0x5c4   : > { %3047 = vrot.lane.b32.xlu0 %v3871_v40, %s3435_s29  ;;  %s4055_s29 = scalar_lea.hbm %s4193_s10, %s2574_s17 }
 0x5c8   : > { %3052 = vrot.lane.b32.xlu0 %v3857_v33, %s3436_s26 }
 0x5cc   : > { %1489 = vrot.lane.b32.xlu0 %v3862_v34, %s3436_s26 }
 0x63b   : > { %v1193_v17 = vpop.xlane.xlu0 %1192 }
 0x63c   : > { %v1194_v19 = vsub.f32 %v1187_v13, %v1193_v17 }
 0x63e   : > { %v1195_v20 = vmul.f32 1.442695, %v1194_v19 }
 0x63f   : > { %v3048_v21 = vpop.permute.xlu0 %3047 }
 0x640   : > { %3095 = vpow2.f32 %v1195_v20  ;;  %v3050_v22 = vunpack.i.h.bf16 %v3048_v21  ;;  %v3049_v23 = vunpack.i.l.bf16 %v3048_v21 }
 0x642   : > { %v2853_v24 = vpack.c.bf16 %v3050_v22, %v3049_v23 }
 0x643   : > { %v3053_v47 = vpop.permute.xlu0 %3052 }
 0x644   : > { %2854 = vmatpush3.bf16.msra.mxu0 %v2853_v24  ;;  %v3055_v48 = vunpack.i.h.bf16 %v3053_v47  ;;  %v3054_v49 = vunpack.i.l.bf16 %v3053_v47 }
 0x645   : > { %2855 = vmatprep.subr.bf16.mxu0 %v3430_v14 }
 0x646   : > { %v2856_v51 = vpack.c.bf16 %v3055_v48, %v3054_v49 }
 0x647   : > { %v1490_v52 = vpop.permute.xlu0 %1489 }
 0x64a   : > { %v3926_v28 = vpop.eup %3095 }
 0x64b   : > { %2722 = vmatmul.mubr.msk.f32.vlgmr.msra.gmra.mrb[8].mxu1 %vm821_vm4, %v3926_v28 }
 0x64c   : > { %2851 = vmatpush3.bf16.xpose.msk.msra.mxu1 %vm3853_vm3, %v2849_v29  ;;  %2728 = vmatprep.mubr.msk.f32.mxu1 %vm3431_vm1, %v3432_v18 }
 0x64d   : > { %2859 = vmatprep.subr.bf16.mxu1 %v3430_v14 }
 0x653   : > { %2729 = vmatmul.mubr.msk.f32.vlgmr.msra.gmra.mrb[10].mxu1 %vm741_vm2, %v1299_v30 }
 0x654   : > { %2749 = vmatprep.mubr.msk.f32.mxu1 %vm3431_vm1, %v3432_v18 }
 0x71e   : > { %v3938_v32 = vpop.f32.mrb[8].mxu1 }
 0x71f   : > { %v2723_v35 = vpop.f32.mrb[9].mxu1 }
 0x726   : > { %v1378_v36 = vpop.f32.mrb[10].mxu1 }
 0x727   : > { %v2730_v37 = vpop.f32.mrb[11].mxu1  ;;  %v1382_v38 = vsel %vm821_vm4, %v1378_v36, -inf }
 0x728   : > { %1383 = vmax.xlane.f32.xlu1 %v1382_v38 }
 0x739   : > { %3057 = vrot.lane.b32.xlu1 %v3871_v40, %s3436_s26  ;;  %s4194_s26 = smov %s4193_s10 }
 0x73d   : > { %3062 = vrot.lane.b32.xlu1 %v3857_v33, %s3437_s7 }
 0x741   : > { %1680 = vrot.lane.b32.xlu1 %v3862_v34, %s3437_s7 }
 0x7b5   : > { %v1384_v39 = vpop.xlane.xlu1 %1383 }
 0x7b6   : > { %v1385_v41 = vsub.f32 %v1378_v36, %v1384_v39  ;;  %v1006_v39 = vsel %vm821_vm4, %v3904_v8, 0.0 }
 0x7b8   : > { %v1386_v42 = vmul.f32 1.442695, %v1385_v41  ;;  %v828_v41 = vsel %vm821_vm4, %v3882_v54, 0.0 }
 0x7b9   : > { %v3058_v43 = vpop.permute.xlu1 %3057 }
 0x7ba   : > { %3097 = vpow2.f32 %v1386_v42  ;;  %v3060_v44 = vunpack.i.h.bf16 %v3058_v43  ;;  %v3059_v45 = vunpack.i.l.bf16 %v3058_v43 }
 0x7bc   : > { %v2860_v46 = vpack.c.bf16 %v3060_v44, %v3059_v45 }
 0x7bd   : > { %v3063_v3 = vpop.permute.xlu1 %3062 }
 0x7be   : > { %2861 = vmatpush3.bf16.msra.mxu1 %v2860_v46  ;;  %v3065_v4 = vunpack.i.h.bf16 %v3063_v3  ;;  %v3064_v5 = vunpack.i.l.bf16 %v3063_v3 }
 0x7bf   : > { %2862 = vmatprep.subr.bf16.mxu1 %v3430_v14 }
 0x7c0   : > { %v2863_v7 = vpack.c.bf16 %v3065_v4, %v3064_v5 }
 0x7c1   : > { %v1681_v9 = vpop.permute.xlu1 %1680 }
 0x7c4   : > { %v3948_v50 = vpop.eup %3097 }
 0x7c5   : > { %2736 = vmatmul.mubr.msk.f32.vlgmr.msra.gmra.mrb[8].mxu0 %vm821_vm4, %v3948_v50 }
 0x7c6   : > { %2858 = vmatpush3.bf16.xpose.msk.msra.mxu0 %vm3853_vm3, %v2856_v51  ;;  %2742 = vmatprep.mubr.msk.f32.mxu0 %vm3431_vm1, %v3432_v18 }
 0x7c7   : > { %2866 = vmatprep.subr.bf16.mxu0 %v3430_v14 }
 0x7cd   : > { %2743 = vmatmul.mubr.msk.f32.vlgmr.msra.gmra.mrb[10].mxu0 %vm741_vm2, %v1490_v52 }
 0x7ce   : > { %2763 = vmatprep.mubr.msk.f32.mxu0 %vm3431_vm1, %v3432_v18 }
 0x898   : > { %v3960_v53 = vpop.f32.mrb[8].mxu0 }
 0x899   : > { %v2737_v55 = vpop.f32.mrb[9].mxu0 }
 0x8a0   : > { %v1569_v56 = vpop.f32.mrb[10].mxu0 }
 0x8a1   : > { %v2744_v58 = vpop.f32.mrb[11].mxu0  ;;  %v1573_v59 = vsel %vm821_vm4, %v1569_v56, -inf }
 0x8a2   : > { %1574 = vmax.xlane.f32.xlu0 %v1573_v59 }
 0x8b8   : > { %3067 = vrot.lane.b32.xlu0 %v3871_v40, %s3437_s7  ;;  %s2334_s7 = scalar_lea.sflag [#allocation8], %s3802_s1 }
 0x8bc   : > { %3072 = vrot.lane.b32.xlu0 %v3857_v33, %s3438_s30 }
 0x8c0   : > { %1871 = vrot.lane.b32.xlu0 %v3862_v34, %s3438_s30 }
 0x92f   : > { %v1575_v60 = vpop.xlane.xlu0 %1574 }
 0x930   : > { %v1576_v61 = vsub.f32 %v1569_v56, %v1575_v60 }
 0x932   : > { %v1577_v62 = vmul.f32 1.442695, %v1576_v61 }
 0x933   : > { %v3068_v63 = vpop.permute.xlu0 %3067 }
 0x934   : > { %3099 = vpow2.f32 %v1577_v62  ;;  %v3070_v0 = vunpack.i.h.bf16 %v3068_v63  ;;  %v3069_v1 = vunpack.i.l.bf16 %v3068_v63 }
 0x936   : > { %v2867_v2 = vpack.c.bf16 %v3070_v0, %v3069_v1 }
 0x937   : > { %v3073_v25 = vpop.permute.xlu0 %3072 }
 0x938   : > { %2868 = vmatpush3.bf16.msra.mxu0 %v2867_v2  ;;  %v3075_v26 = vunpack.i.h.bf16 %v3073_v25  ;;  %v3074_v27 = vunpack.i.l.bf16 %v3073_v25 }
 0x939   : > { %2869 = vmatprep.subr.bf16.mxu0 %v3430_v14 }
 0x93e   : > { %v3970_v6 = vpop.eup %3099 }
 0x93f   : > { %2750 = vmatmul.mubr.msk.f32.vlgmr.msra.gmra.mrb[12].mxu1 %vm821_vm4, %v3970_v6 }
 0x940   : > { %2865 = vmatpush3.bf16.xpose.msk.msra.mxu1 %vm3853_vm3, %v2863_v7  ;;  %2756 = vmatprep.mubr.msk.f32.mxu1 %vm3431_vm1, %v3432_v18 }
 0x941   : > { %2873 = vmatprep.subr.bf16.mxu1 %v3430_v14 }
 0x947   : > { %2757 = vmatmul.mubr.msk.f32.vlgmr.msra.gmra.mrb[14].mxu1 %vm741_vm2, %v1681_v9 }
 0x948   : > { %2777 = vmatprep.mubr.msk.f32.mxu1 %vm3431_vm1, %v3432_v18 }
 0xa12   : > { %v3982_v10 = vpop.f32.mrb[12].mxu1 }
 0xa13   : > { %v2751_v12 = vpop.f32.mrb[13].mxu1 }
 0xa14   : > { %v1197_v12 = vsel %vm821_vm4, %v3926_v28, 0.0 }
 0xa1a   : > { %v1760_v13 = vpop.f32.mrb[14].mxu1 }
 0xa1b   : > { %v2758_v15 = vpop.f32.mrb[15].mxu1  ;;  %v1764_v16 = vsel %vm821_vm4, %v1760_v13, -inf }
 0xa1c   : > { %1765 = vmax.xlane.f32.xlu1 %v1764_v16 }
 0xa2d   : > { %3077 = vrot.lane.b32.xlu1 %v3871_v40, %s3438_s30  ;;  %s3325_s30 = scalar_lea.vmem %s4057_s23, 128 }
 0xa2e   : > { %p3326_p7 = scmp.ne.s32.totalorder %s4057_s23, %s3325_s30 }
 0xa30   : > { %p3327_p4 = pnand %p3326_p7, %p4195_p6 }
 0xa31   : > { %3082 = vrot.lane.b32.xlu1 %v3857_v33, %s3439_s11  ;;  %v2870_v33 = vpack.c.bf16 %v3075_v26, %v3074_v27 }
 0xa32   : > { %p3328_p1 = pneg %p3327_p4 }
 0xa35   : > { %2062 = vrot.lane.b32.xlu1 %v3862_v34, %s3439_s11  ;;  %v1872_v34 = vpop.permute.xlu0 %1871 }
 0xaa9   : > { %v1766_v17 = vpop.xlane.xlu1 %1765 }
 0xaaa   : > { %v1767_v19 = vsub.f32 %v1760_v13, %v1766_v17 }
 0xaac   : > { %v1768_v20 = vmul.f32 1.442695, %v1767_v19 }
 0xaad   : > { %v3078_v21 = vpop.permute.xlu1 %3077 }
 0xaae   : > { %3101 = vpow2.f32 %v1768_v20  ;;  %v3080_v22 = vunpack.i.h.bf16 %v3078_v21  ;;  %v3079_v23 = vunpack.i.l.bf16 %v3078_v21 }
 0xab0   : > { %v2874_v24 = vpack.c.bf16 %v3080_v22, %v3079_v23 }
 0xab1   : > { %v3083_v49 = vpop.permute.xlu1 %3082 }
 0xab2   : > { %2875 = vmatpush3.bf16.msra.mxu1 %v2874_v24  ;;  %v3084_v51 = vunpack.i.l.bf16 %v3083_v49 }
 0xab3   : > { %2876 = vmatprep.subr.bf16.mxu1 %v3430_v14 }
 0xab5   : > { %v2063_v54 = vpop.permute.xlu1 %2062 }
 0xab8   : > { %v3992_v29 = vpop.eup %3101 }
 0xab9   : > { %2764 = vmatmul.mubr.msk.f32.vlgmr.msra.gmra.mrb[12].mxu0 %vm821_vm4, %v3992_v29  ;;  %v1770_v13 = vsel %vm821_vm4, %v3992_v29, 0.0 }
 0xaba   : > { %2872 = vmatpush3.bf16.xpose.msk.msra.mxu0 %vm3853_vm3, %v2870_v33  ;;  %2770 = vmatprep.mubr.msk.f32.mxu0 %vm3431_vm1, %v3432_v18 }
 0xabb   : > { %2880 = vmatprep.subr.bf16.mxu0 %v3430_v14 }
 0xac1   : > { %2771 = vmatmul.mubr.msk.f32.vlgmr.msra.gmra.mrb[14].mxu0 %vm741_vm2, %v1872_v34 }
 0xac2   : > { %2791 = vmatprep.mubr.msk.f32.mxu0 %vm3431_vm1, %v3432_v18 }
 0xb8c   : > { %v4004_v30 = vpop.f32.mrb[12].mxu0 }
 0xb8d   : > { %v2765_v35 = vpop.f32.mrb[13].mxu0 }
 0xb94   : > { %v1951_v36 = vpop.f32.mrb[14].mxu0 }
 0xb95   : > { %v2772_v37 = vpop.f32.mrb[15].mxu0  ;;  %v1955_v38 = vsel %vm821_vm4, %v1951_v36, -inf }
 0xb96   : > { %1956 = vmax.xlane.f32.xlu0 %v1955_v38 }
 0xbac   : > { %3087 = vrot.lane.b32.xlu0 %v3871_v40, %s3439_s11  ;;  %v3085_v40 = vunpack.i.h.bf16 %v3083_v49  ;;  %s3329_s11 = sshll.u32 %s3447_s8, 4  ;;  %s3330_s11 = int_to_ptr.vmem [resolvable:$false] %s3329_s11 }
 0xbad   : > { %p3332_p11 = scmp.lt.s32.totalorder %s4057_s23, %s3330_s11 }
 0xbae   : > { %v2877_v52 = vpack.c.bf16 %v3085_v40, %v3084_v51 }
 0xbcb   : > { %1007 = vadd.xlane.f32.xlu0 %v1006_v39 }
 0xbcf   : > { %829 = vadd.xlane.f32.xlu0 %v828_v41 }
 0xc23   : > { %v1957_v42 = vpop.xlane.xlu0 %1956 }
 0xc24   : > { %v1958_v43 = vsub.f32 %v1951_v36, %v1957_v42 }
 0xc26   : > { %v1959_v44 = vmul.f32 1.442695, %v1958_v43 }
 0xc27   : > { %v3088_v45 = vpop.permute.xlu0 %3087 }
 0xc28   : > { %3103 = vpow2.f32 %v1959_v44  ;;  %v3090_v46 = vunpack.i.h.bf16 %v3088_v45  ;;  %v3089_v47 = vunpack.i.l.bf16 %v3088_v45 }
 0xc2a   : > { %v2881_v48 = vpack.c.bf16 %v3090_v46, %v3089_v47 }
 0xc2c   : > { %2882 = vmatpush3.bf16.msra.mxu0 %v2881_v48 }
 0xc2d   : > { %2883 = vmatprep.subr.bf16.mxu0 %v3430_v14 }
 0xc32   : > { %v3104_v8 = vpop.eup %3103 }
 0xc33   : > { %2778 = vmatmul.mubr.msk.f32.vlgmr.msra.gmra.mrb[16].mxu1 %vm821_vm4, %v3104_v8  ;;  %v1961_v15 = vsel %vm821_vm4, %v3104_v8, 0.0 }
 0xc34   : > { %2879 = vmatpush3.bf16.xpose.msk.msra.mxu1 %vm3853_vm3, %v2877_v52  ;;  %2784 = vmatprep.mubr.msk.f32.mxu1 %vm3431_vm1, %v3432_v18 }
 0xc3b   : > { %2785 = vmatmul.mubr.msk.f32.vlgmr.msra.gmra.mrb[18].mxu1 %vm741_vm2, %v2063_v54 }
 0xc58   : > { %v1008_v55 = vpop.xlane.xlu0 %1007 }
 0xc59   : > { %3105 = vrcp.f32 %v1008_v55 }
 0xc5c   : > { %v830_v56 = vpop.xlane.xlu0 %829 }
 0xc5d   : > { %3107 = vrcp.f32 %v830_v56 }
 0xc63   : > { %v3106_v58 = vpop.eup %3105 }
 0xc64   : > { %v1010_v59 = vmul.f32 %v3106_v58, %v1008_v55 }
 0xc66   : > { %v1011_v60 = vsub.f32 2.0, %v1010_v59  ;;  %v2249_v59 = vld [vmem:[#allocation17 + $0x8] sm:$0xff] }
 0xc67   : > { %v3108_v61 = vpop.eup %3107 }
 0xc68   : > { %v1012_v62 = vmul.f32 %v3106_v58, %v1011_v60  ;;  %v832_v63 = vmul.f32 %v3108_v61, %v830_v56  ;;  %v2248_v58 = vld [vmem:[#allocation17] sm:$0xff] }
 0xc69   : > { %v2884_v60 = vpack.c.bf16 %v2249_v59, %v2248_v58 }
 0xc6a   : > { %v833_v0 = vsub.f32 2.0, %v832_v63  ;;  %v1094_v31 = vmul.f32 %v3916_v11, %v1012_v62  ;;  %v1388_v11 = vsel %vm821_vm4, %v3948_v50, 0.0  ;;  %v2251_v62 = vld [vmem:[#allocation17 + $0x18] sm:$0xff] }
 0xc6c   : > { %v834_v1 = vmul.f32 %v3108_v61, %v833_v0  ;;  %v2250_v61 = vld [vmem:[#allocation17 + $0x10] sm:$0xff] }
 0xc6d   : > { %v2887_v0 = vpack.c.bf16 %v2251_v62, %v2250_v61 }
 0xc6e   : > { %v908_v2 = vmul.f32 %v3894_v57, %v834_v1  ;;  %v1579_v57 = vsel %vm821_vm4, %v3970_v6, 0.0 }
 0xc70   : > { %909 = vst.msk [vmem:[#allocation5] sm:$0xff] %vm741_vm2, %v908_v2 }
 0xd06   : > { %v4023_v3 = vpop.f32.mrb[16].mxu1 }
 0xd07   : > { %v2779_v4 = vpop.f32.mrb[17].mxu1 }
 0xd0e   : > { %v2142_v5 = vpop.f32.mrb[18].mxu1 }
 0xd0f   : > { %v2786_v7 = vpop.f32.mrb[19].mxu1  ;;  %v2146_v9 = vsel %vm821_vm4, %v2142_v5, -inf }
 0xd10   : > { %2147 = vmax.xlane.f32.xlu1 %v2146_v9 }
 0xd14   : > { %1198 = vadd.xlane.f32.xlu1 %v1197_v12 }
 0xd18   : > { %1389 = vadd.xlane.f32.xlu1 %v1388_v11 }
 0xd1c   : > { %1580 = vadd.xlane.f32.xlu1 %v1579_v57 }
 0xd20   : > { %1771 = vadd.xlane.f32.xlu1 %v1770_v13 }
 0xd24   : > { %1962 = vadd.xlane.f32.xlu1 %v1961_v15 }
 0xd9d   : > { %v2148_v16 = vpop.xlane.xlu1 %2147 }
 0xd9e   : > { %v2149_v17 = vsub.f32 %v2142_v5, %v2148_v16 }
 0xda0   : > { %v2150_v19 = vmul.f32 1.442695, %v2149_v17 }
 0xda1   : > { %v1199_v28 = vpop.xlane.xlu1 %1198 }
 0xda2   : > { %3109 = vpow2.f32 %v2150_v19 }
 0xda3   : > { %3111 = vrcp.f32 %v1199_v28 }
 0xda5   : > { %v1390_v20 = vpop.xlane.xlu1 %1389 }
 0xda6   : > { %3113 = vrcp.f32 %v1390_v20 }
 0xda9   : > { %v1581_v50 = vpop.xlane.xlu1 %1580 }
 0xdaa   : > { %3115 = vrcp.f32 %v1581_v50 }
 0xdac   : > { %v3110_v21 = vpop.eup %3109 }
 0xdad   : > { %v3112_v6 = vpop.eup %3111  ;;  %2792 = vmatmul.mubr.msk.f32.vlgmr.msra.gmra.mrb[16].mxu0 %vm821_vm4, %v3110_v21  ;;  %v1772_v22 = vpop.xlane.xlu1 %1771  ;;  %v2152_v23 = vsel %vm821_vm4, %v3110_v21, 0.0 }
 0xdae   : > { %v1201_v24 = vmul.f32 %v3112_v6, %v1199_v28  ;;  %3117 = vrcp.f32 %v1772_v22  ;;  %2153 = vadd.xlane.f32.xlu1 %v2152_v23  ;;  %2802 = vmatprep.mubr.msk.f32.mxu0 %vm3431_vm1, %v3432_v18 }
 0xdaf   : > { %2885 = vmatpush3.bf16.msra.mxu0 %v2884_v60 }
 0xdb0   : > { %v1202_v25 = vsub.f32 2.0, %v1201_v24  ;;  %v3114_v27 = vpop.eup %3113  ;;  %2886 = vmatprep.subr.bf16.mxu0 %v3430_v14  ;;  %v2571_v14 = vld [vmem:[%s4192_s15] ss:$0 sm:$0xff] }
 0xdb1   : > { %v1963_v26 = vpop.xlane.xlu1 %1962  ;;  %v1392_v34 = vmul.f32 %v3114_v27, %v1390_v20 }
 0xdb2   : > { %v1203_v29 = vmul.f32 %v3112_v6, %v1202_v25  ;;  %3119 = vrcp.f32 %v1963_v26 }
 0xdb3   : > { %v1393_v37 = vsub.f32 2.0, %v1392_v34  ;;  %2888 = vmatpush3.bf16.msra.mxu0 %v2887_v0 }
 0xdb4   : > { %v1285_v33 = vmul.f32 %v3938_v32, %v1203_v29  ;;  %v3116_v35 = vpop.eup %3115 }
 0xdb5   : > { %v1583_v38 = vmul.f32 %v3116_v35, %v1581_v50  ;;  %v1394_v43 = vmul.f32 %v3114_v27, %v1393_v37 }
 0xdb6   : > { %1287 = vrot.lane.b32.xlu0 %v1285_v33, %s3440_s18  ;;  %s3331_s18 = scalar_lea.vmem %s3330_s11, 256 }
 0xdb7   : > { %v1584_v44 = vsub.f32 2.0, %v1583_v38  ;;  %v1476_v48 = vmul.f32 %v3960_v53, %v1394_v43  ;;  %p3333_p12 = scmp.lt.s32.totalorder %s3331_s18, %s3325_s30 }
 0xdb8   : > { %v3118_v36 = vpop.eup %3117 }
 0xdb9   : > { %v1774_v39 = vmul.f32 %v3118_v36, %v1772_v22  ;;  %v1585_v47 = vmul.f32 %v3116_v35, %v1584_v44  ;;  %p3334_p9 = por %p3333_p12, %p3332_p11 }
 0xdbb   : > { %v1775_v41 = vsub.f32 2.0, %v1774_v39  ;;  %v1667_v40 = vmul.f32 %v3982_v10, %v1585_v47  ;;  %p3335_p0 = pnand %p3334_p9, %p3328_p1 }
 0xdbc   : > { %v3120_v42 = vpop.eup %3119 }
 0xdbd   : > { %v1776_v18 = vmul.f32 %v3118_v36, %v1775_v41  ;;  %v1965_v45 = vmul.f32 %v3120_v42, %v1963_v26 }
 0xdbf   : > { %1096 = vrot.lane.b32.xlu1 %v1094_v31, %s3441_s3  ;;  %v1858_v46 = vmul.f32 %v4004_v30, %v1776_v18  ;;  %v1966_v32 = vsub.f32 2.0, %v1965_v45 }
 0xdc1   : > { %1860 = vrot.lane.b32.xlu0 %v1858_v46, %s3442_s24  ;;  %v1967_v49 = vmul.f32 %v3120_v42, %v1966_v32 }
 0xdc3   : > { %1478 = vrot.lane.b32.xlu1 %v1476_v48, %s3443_s13  ;;  %v2049_v51 = vmul.f32 %v4023_v3, %v1967_v49 }
 0xdc7   : > { %1669 = vrot.lane.b32.xlu1 %v1667_v40, %s3444_s21 }
 0xdcb   : > { %2051 = vrot.lane.b32.xlu1 %v2049_v51, %s3445_s27 }
 0xe28   : > { %v1288_v52 = vpop.permute.xlu0 %1287 }
 0xe33   : > { %v1861_v10 = vpop.permute.xlu0 %1860 }
 0xe3b   : > { %v2154_v8 = vpop.xlane.xlu1 %2153 }
 0xe3c   : > { %3121 = vrcp.f32 %v2154_v8 }
 0xe3f   : > { %v1097_v30 = vpop.permute.xlu1 %1096 }
 0xe40   : > { %1100 = vst.msk [vmem:[#allocation5] sm:$0xff] %vm1099_vm5, %v1097_v30 }
 0xe41   : > { %1291 = vst.msk [vmem:[#allocation5] sm:$0xff] %vm1290_vm6, %v1288_v52 }
 0xe43   : > { %v1479_v53 = vpop.permute.xlu1 %1478 }
 0xe44   : > { %1482 = vst.msk [vmem:[#allocation5] sm:$0xff] %vm1481_vm7, %v1479_v53 }
 0xe46   : > { %v3122_v56 = vpop.eup %3121 }
 0xe47   : > { %v1670_v54 = vpop.permute.xlu1 %1669  ;;  %v2156_v63 = vmul.f32 %v3122_v56, %v2154_v8 }
 0xe48   : > { %1673 = vst.msk [vmem:[#allocation5] sm:$0xff] %vm1672_vm8, %v1670_v54 }
 0xe49   : > { %1864 = vst.msk [vmem:[#allocation5] sm:$0xff] %vm1863_vm9, %v1861_v10  ;;  %v2157_v31 = vsub.f32 2.0, %v2156_v63 }
 0xe4b   : > { %v2052_v55 = vpop.permute.xlu1 %2051  ;;  %v2158_v1 = vmul.f32 %v3122_v56, %v2157_v31 }
 0xe4c   : > { %2055 = vst.msk [vmem:[#allocation5] sm:$0xff] %vm2054_vm10, %v2052_v55 }
 0xe80   : > { %v2236_v2 = vpop.f32.mrb[16].mxu0 }
 0xe81   : > { %v2240_v3 = vmul.f32 %v2236_v2, %v2158_v1  ;;  %v2793_v4 = vpop.f32.mrb[17].mxu0 }
 0xe83   : > { %2242 = vrot.lane.b32.xlu0 %v2240_v3, %s3446_s14 }
 0xef5   : > { %v2243_v5 = vpop.permute.xlu0 %2242 }
 0xef6   : > { %2246 = vst.msk [vmem:[#allocation5] sm:$0xff] %vm2245_vm11, %v2243_v5 }
 0xefd   : > { %v2247_v7 = vld [vmem:[#allocation5] sm:$0xff] }
 0xefe   : > { %2803 = vmatmul.mubr.msk.f32.vlgmr.msra.gmra.mrb[18].mxu0 %vm483_vm0, %v2247_v7 }
 0xfd1   : > { %v2328_v9 = vpop.f32.mrb[18].mxu0 }
 0xfd2   : > { %v2329_v12 = vadd.f32 %v2571_v14, %v2328_v9  ;;  %v2804_v11 = vpop.f32.mrb[19].mxu0 }
 0xfd4   : > { %2332 = vst.msk [vmem:[%s472_s19] sm:$0xff] %vm483_vm0, %v2329_v12 }
 0xfd5   : > { %3338 = shalt.err (!%p3335_p0)
}
 0xfd6   : > { %s3339_s1 = scalar_lea.hbm %s4055_s29, 128  ;;  %s3343_s13 = scalar_lea.hbm %s4194_s26, 256 }
 0xfd7   : > { %p3340_p8 = scmp.ne.s32.totalorder %s4055_s29, %s3339_s1  ;;  %p3344_p2 = scmp.lt.u32.totalorder %s4055_s29, %s4194_s26 }
 0xfd8   : > { %p3345_p10 = scmp.lt.u32.totalorder %s3343_s13, %s3339_s1  ;;  %p3347_p7 = scmp.lt.u32.totalorder %s3339_s1, %s4055_s29 }
 0xfd9   : > { %p3341_p3 = pnand %p3340_p8, %p4195_p6 }
 0xfda   : > { %p3346_p5 = por %p3345_p10, %p3344_p2 }
 0xfdb   : > { %p3342_p13 = pneg %p3341_p3 }
 0xfdc   : > { %p3348_p4 = por %p3347_p7, %p3346_p5 }
 0xfde   : > { %p3349_p1 = pnand %p3348_p4, %p3342_p13 }
 0xfe0   : > { %3352 = shalt.err (!%p3349_p1)
}
 0xfe1   : > { %2911 = dma.vmem_to_hbm [thread:$0]  (%p4195_p6), %s4057_s23, 128, %s4055_s29, %s2334_s7  }
 0xfe2 PF: > { %s4196_s22 = sld [smem:[#allocation24_spill]]  ;;  %s4197_s14 = sld [smem:[#allocation30_spill]] }
 0xfe3   : > { %s4198_s12 = sld [smem:[#allocation27_spill]] }
 0xfe8   : > { %s2360_s5 = sand.u32 1, %s4196_s22   ;;  %p4199_p11 = scmp.ne.s32.totalorder %s4197_s14, 0 }
 0xfe9   : > { %p4200_p12 = scmp.ge.s32.totalorder %s4198_s12, 2  ;;  %s2361_s15 = scalar_lea.sflag [#allocation8], %s2360_s5 }
 0xfeb   : > { %p2937_p9 = pnand %p4200_p12, %p4199_p11 }
 0xfed   : > { %3394 = dma.done.wait (!%p2937_p9), %s2361_s15, 128  }
 0xfee   : > { %3396 = vsyncadd (!%p2937_p9), %s2361_s15, 4294967168  ;;  %s29_s10 = sadd.s32 1, %s4198_s12   ;;  %s4201_s17 = sld [smem:[#allocation25_spill]] }
 0xfef   : > { %p26_p0 = scmp.ge.s32.totalorder %s29_s10, 4   ;;  %s4202_s29 = sld [smem:[#allocation33_spill]] }
 0xff0   : > { %s4203_s25 = sld [smem:[#allocation31_spill]]  ;;  %s4204_s27 = smov %s3403_s28 }
 0xff1   : > { %s4206_s30 = smov %s3415_s9  ;;  %28 = sbr.rel (!%p26_p0) target bundleno = 16 (0x10), region = 141 }
 0xff4   : > { %s4205_s28 = smov %s4201_s17 }
 0xff6   : > { %s4207_s9 = smov %s4203_s25 }
 0xff8   :  { %2366 = vsyncpa [#allocation7], 1 }
 0xff9   :  { %2368 = vsyncpa [#allocation7 + $0x1], 1 }
 0xffa   :  { %2369 = vsyncpa [#allocation10], 1 }
 0xffb   :  { %2371 = vsyncpa [#allocation10 + $0x1], 1 }
 0xffc   :  { %2372 = vsyncpa [#allocation13], 1 }
 0xffd   :  { %2373 = vsyncpa [#allocation16], 1 }
 0xffe   :  { %2374 = vsyncpa [#allocation8], 1 }
 0xfff   :  { %2376 = vsyncpa [#allocation8 + $0x1], 1 }

</bundles_post_ra>
